<compile_context>
chip_gen: v7x
topology: tpu7x:2x2x1
jax: 0.10.0
libtpu: 0.0.40
codegen_flags: <defaults>
</compile_context>

<pallas_src>
import jax
import jax.numpy as jnp
from jax.experimental import pallas as pl
from jax.experimental.pallas import tpu as pltpu

MAX_LENGTH = 7
LANE = 128


def _round_up(x, m):
    return (x + m - 1) // m * m


def _pad2(x, rows, cols):
    return jnp.pad(x, ((0, rows - x.shape[0]), (0, cols - x.shape[1])))


def _attn_decoder_kernel(emb_ref, h0_ref, enc_ref,
                         w_attn_e_ref, w_attn_h_ref, b_attn_ref,
                         w_comb_e_ref, w_comb_a_ref, b_comb_ref,
                         w_ih_ref, w_hh_ref, b_ih_ref, b_hh_ref,
                         w_out_ref, b_out_ref,
                         logp_ref, attn_w_ref, h_out_ref,
                         h_scr):
    """One fused decode step (grid axis 0 = timestep, sequential).

    emb_ref:   (1, B, HP)  embedded token rows for this step (f32)
    h0_ref:    (B, HP)     initial hidden state (resident, read at t==0 only)
    enc_ref:   (LP, HP)    padded encoder outputs (resident)
    w_*_ref:   bf16 weights (lane-padded / gate-aligned), b_*_ref: f32 biases
    logp_ref:  (1, B, VP)  per-step log-probs (padded vocab lanes ~ -1e30)
    attn_w_ref:(1, B, LP)  per-step attention weights (padded lanes = 0)
    h_out_ref: (B, HP)     final hidden (resident output)
    h_scr:     (B, HP)     VMEM scratch carrying the GRU state across steps
    """
    HP = h_scr.shape[1]
    t = pl.program_id(0)

    @pl.when(t == 0)
    def _init():
        h_scr[...] = h0_ref[...]

    h = h_scr[...]                         # (B, HP) f32
    emb = emb_ref[0]                       # (B, HP) f32
    # TODO(synk): nn.Dropout(p=0.1) on the embedding is train-mode only; eval-mode identity here.

    emb_b = emb.astype(jnp.bfloat16)
    h_b = h.astype(jnp.bfloat16)

    # attn_weights = softmax(attn(cat(embedded, hidden)))  -- concat expressed as split weights.
    attn_logits = (
        jnp.dot(emb_b, w_attn_e_ref[...], preferred_element_type=jnp.float32)
        + jnp.dot(h_b, w_attn_h_ref[...], preferred_element_type=jnp.float32)
        + b_attn_ref[...])                                  # (B, LP); padded lanes ~ -1e30
    am = jnp.max(attn_logits, axis=-1, keepdims=True)
    ae = jnp.exp(attn_logits - am)
    attn_w = ae / jnp.sum(ae, axis=-1, keepdims=True)       # padded lanes -> exactly 0
    attn_w_ref[0] = attn_w

    # attn_applied = attn_weights @ encoder_outputs  (kept f32: activations, not weights)
    attn_applied = jnp.dot(attn_w, enc_ref[...], preferred_element_type=jnp.float32)  # (B, HP)

    # attn_combine(cat(embedded, attn_applied)) -> ReLU
    comb = (
        jnp.dot(emb_b, w_comb_e_ref[...], preferred_element_type=jnp.float32)
        + jnp.dot(attn_applied.astype(jnp.bfloat16), w_comb_a_ref[...],
                  preferred_element_type=jnp.float32)
        + b_comb_ref[...])
    x = jnp.maximum(comb, 0.0)

    # Single GRU step, PyTorch gate order (r, z, n); each gate block is 128-lane aligned.
    gi = jnp.dot(x.astype(jnp.bfloat16), w_ih_ref[...],
                 preferred_element_type=jnp.float32) + b_ih_ref[...]
    gh = jnp.dot(h_b, w_hh_ref[...],
                 preferred_element_type=jnp.float32) + b_hh_ref[...]
    r = jax.nn.sigmoid(gi[:, 0 * HP:1 * HP] + gh[:, 0 * HP:1 * HP])
    z = jax.nn.sigmoid(gi[:, 1 * HP:2 * HP] + gh[:, 1 * HP:2 * HP])
    n = jnp.tanh(gi[:, 2 * HP:3 * HP] + r * gh[:, 2 * HP:3 * HP])
    h_new = (1.0 - z) * n + z * h
    h_scr[...] = h_new
    h_out_ref[...] = h_new

    # out projection + log-softmax (padded vocab lanes carry bias -1e30 -> probability 0)
    logits = jnp.dot(h_new.astype(jnp.bfloat16), w_out_ref[...],
                     preferred_element_type=jnp.float32) + b_out_ref[...]
    m = jnp.max(logits, axis=-1, keepdims=True)
    shifted = logits - m
    lse = jnp.log(jnp.sum(jnp.exp(shifted), axis=-1, keepdims=True))
    logp_ref[0] = shifted - lse


def prepare_params(torch_params, hidden_size, output_size, max_length=MAX_LENGTH):
    """Convert PyTorch-layout parameters into the padded / transposed kernel layout."""
    H, V, L = hidden_size, output_size, max_length
    HP, VP, LP = _round_up(H, LANE), _round_up(V, LANE), _round_up(L, LANE)
    NEG = jnp.float32(-1e30)

    emb = torch_params["embedding"].astype(jnp.float32)                       # (V, H)

    w_attn = torch_params["attn_w"].astype(jnp.float32)                        # (L, 2H)
    b_attn = torch_params["attn_b"].astype(jnp.float32)                        # (L,)
    w_attn_e = _pad2(w_attn[:, :H].T, HP, LP).astype(jnp.bfloat16)
    w_attn_h = _pad2(w_attn[:, H:].T, HP, LP).astype(jnp.bfloat16)
    b_attn_p = jnp.full((1, LP), NEG, jnp.float32).at[0, :L].set(b_attn)

    w_comb = torch_params["attn_combine_w"].astype(jnp.float32)                # (H, 2H)
    b_comb = torch_params["attn_combine_b"].astype(jnp.float32)                # (H,)
    w_comb_e = _pad2(w_comb[:, :H].T, HP, HP).astype(jnp.bfloat16)
    w_comb_a = _pad2(w_comb[:, H:].T, HP, HP).astype(jnp.bfloat16)
    b_comb_p = jnp.zeros((1, HP), jnp.float32).at[0, :H].set(b_comb)

    def gate_align_w(w):   # torch (3H, H), gate order r,z,n -> (HP, 3*HP), gates lane-aligned
        wt = w.astype(jnp.float32).T                                           # (H, 3H)
        return jnp.concatenate(
            [_pad2(wt[:, g * H:(g + 1) * H], HP, HP) for g in range(3)], axis=1
        ).astype(jnp.bfloat16)

    def gate_align_b(b):   # torch (3H,) -> (1, 3*HP)
        b = b.astype(jnp.float32)
        out = jnp.zeros((1, 3 * HP), jnp.float32)
        for g in range(3):
            out = out.at[0, g * HP:g * HP + H].set(b[g * H:(g + 1) * H])
        return out

    w_out = torch_params["out_w"].astype(jnp.float32)                          # (V, H)
    b_out = torch_params["out_b"].astype(jnp.float32)                          # (V,)
    w_out_p = _pad2(w_out.T, HP, VP).astype(jnp.bfloat16)
    b_out_p = jnp.full((1, VP), NEG, jnp.float32).at[0, :V].set(b_out)

    return dict(
        H=H, V=V, L=L, HP=HP, VP=VP, LP=LP,
        embedding=emb,
        w_attn_e=w_attn_e, w_attn_h=w_attn_h, b_attn=b_attn_p,
        w_comb_e=w_comb_e, w_comb_a=w_comb_a, b_comb=b_comb_p,
        w_ih=gate_align_w(torch_params["gru_w_ih"]),
        w_hh=gate_align_w(torch_params["gru_w_hh"]),
        b_ih=gate_align_b(torch_params["gru_b_ih"]),
        b_hh=gate_align_b(torch_params["gru_b_hh"]),
        w_out=w_out_p, b_out=b_out_p,
    )


def attn_decoder_forward_steps(tokens, hidden, encoder_outputs, kp):
    """Runs T teacher-forced decoder steps for B streams in ONE fused Pallas call.

    tokens:          (T, B) int32 token ids
    hidden:          (B, H) float32 initial GRU hidden state (one row per stream)
    encoder_outputs: (L, H) float32, shared by all B streams (e.g. beam search)
    returns (log_probs (T, B, V), final hidden (B, H), attn_weights (T, B, L))
    """
    H, V, L = kp["H"], kp["V"], kp["L"]
    HP, VP, LP = kp["HP"], kp["VP"], kp["LP"]
    T, B = tokens.shape

    # One embedding gather for the whole sequence (dropout: eval-mode identity).
    emb_seq = jnp.take(kp["embedding"], tokens, axis=0)                  # (T, B, H)
    emb_seq = jnp.pad(emb_seq, ((0, 0), (0, 0), (0, HP - H)))             # (T, B, HP)

    h0 = jnp.pad(hidden.astype(jnp.float32), ((0, 0), (0, HP - H)))       # (B, HP)
    enc = _pad2(encoder_outputs.astype(jnp.float32), LP, HP)              # (LP, HP)

    grid_spec = pltpu.PrefetchScalarGridSpec(
        num_scalar_prefetch=0,
        grid=(T,),
        in_specs=[
            pl.BlockSpec((1, B, HP), lambda t: (t, 0, 0)),   # embedded tokens (streamed per step)
            pl.BlockSpec((B, HP), lambda t: (0, 0)),         # initial hidden (resident)
            pl.BlockSpec((LP, HP), lambda t: (0, 0)),        # encoder outputs (resident)
            pl.BlockSpec((HP, LP), lambda t: (0, 0)),        # w_attn_e
            pl.BlockSpec((HP, LP), lambda t: (0, 0)),        # w_attn_h
            pl.BlockSpec((1, LP), lambda t: (0, 0)),         # b_attn
            pl.BlockSpec((HP, HP), lambda t: (0, 0)),        # w_comb_e
            pl.BlockSpec((HP, HP), lambda t: (0, 0)),        # w_comb_a
            pl.BlockSpec((1, HP), lambda t: (0, 0)),         # b_comb
            pl.BlockSpec((HP, 3 * HP), lambda t: (0, 0)),    # w_ih (gate-aligned)
            pl.BlockSpec((HP, 3 * HP), lambda t: (0, 0)),    # w_hh (gate-aligned)
            pl.BlockSpec((1, 3 * HP), lambda t: (0, 0)),     # b_ih
            pl.BlockSpec((1, 3 * HP), lambda t: (0, 0)),     # b_hh
            pl.BlockSpec((HP, VP), lambda t: (0, 0)),        # w_out
            pl.BlockSpec((1, VP), lambda t: (0, 0)),         # b_out
        ],
        out_specs=(
            pl.BlockSpec((1, B, VP), lambda t: (t, 0, 0)),   # per-step log-probs
            pl.BlockSpec((1, B, LP), lambda t: (t, 0, 0)),   # per-step attention weights
            pl.BlockSpec((B, HP), lambda t: (0, 0)),         # final hidden (resident)
        ),
        scratch_shapes=[pltpu.VMEM((B, HP), jnp.float32)],    # hidden carried across steps
    )

    logp, attn_w, h_fin = pl.pallas_call(
        _attn_decoder_kernel,
        out_shape=(
            jax.ShapeDtypeStruct((T, B, VP), jnp.float32),
            jax.ShapeDtypeStruct((T, B, LP), jnp.float32),
            jax.ShapeDtypeStruct((B, HP), jnp.float32),
        ),
        grid_spec=grid_spec,
        compiler_params=pltpu.CompilerParams(
            dimension_semantics=("arbitrary",)),              # recurrent -> sequential steps
    )(
        emb_seq, h0, enc,
        kp["w_attn_e"], kp["w_attn_h"], kp["b_attn"],
        kp["w_comb_e"], kp["w_comb_a"], kp["b_comb"],
        kp["w_ih"], kp["w_hh"], kp["b_ih"], kp["b_hh"],
        kp["w_out"], kp["b_out"],
    )
    return logp[:, :, :V], h_fin[:, :H], attn_w[:, :, :L]


def attn_decoder_forward(token, hidden, encoder_outputs, kp):
    """Exact single-step equivalent of AttnDecoderRNN.forward(input, hidden, encoder_outputs)."""
    logp, h_fin, attn_w = attn_decoder_forward_steps(
        jnp.reshape(token, (1, 1)).astype(jnp.int32),
        jnp.reshape(hidden, (1, -1)),
        encoder_outputs, kp)
    return logp[0], h_fin.reshape(1, 1, -1), attn_w[0]


if __name__ == "__main__":
    hidden_size = 32
    output_size = 64
    H, V, L = hidden_size, output_size, MAX_LENGTH
    T = 7      # decode steps fused into one pallas_call
    B = 8      # independent decode streams (sublane-aligned batch)

    key = jax.random.PRNGKey(0)
    ks = jax.random.split(key, 12)
    bound = 1.0 / jnp.sqrt(jnp.float32(H))
    bound2 = 1.0 / jnp.sqrt(jnp.float32(2 * H))
    u = lambda k, shape, b: jax.random.uniform(k, shape, jnp.float32, -b, b)

    torch_params = {
        "embedding": jax.random.normal(ks[0], (V, H), jnp.float32),
        "attn_w": u(ks[1], (L, 2 * H), bound2), "attn_b": u(ks[2], (L,), bound2),
        "attn_combine_w": u(ks[3], (H, 2 * H), bound2), "attn_combine_b": u(ks[4], (H,), bound2),
        "gru_w_ih": u(ks[5], (3 * H, H), bound), "gru_w_hh": u(ks[6], (3 * H, H), bound),
        "gru_b_ih": u(ks[7], (3 * H,), bound), "gru_b_hh": u(ks[8], (3 * H,), bound),
        "out_w": u(ks[9], (V, H), bound), "out_b": u(ks[10], (V,), bound),
    }
    kp = prepare_params(torch_params, H, V, L)

    tokens = jax.random.randint(ks[11], (T, B), 0, V, jnp.int32)
    hidden0 = jnp.zeros((B, H), jnp.float32)                 # initHidden() per stream
    encoder_outputs = jax.random.normal(key, (L, H), jnp.float32)

    # Fused multi-step, batched decode (main performance path).
    logp, h_fin, attn_w = attn_decoder_forward_steps(tokens, hidden0, encoder_outputs, kp)
    jax.block_until_ready((logp, h_fin, attn_w))
    assert logp.shape == (T, B, V)
    assert h_fin.shape == (B, H)
    assert attn_w.shape == (T, B, L)
    assert bool(jnp.all(jnp.abs(jnp.sum(jnp.exp(logp), axis=-1) - 1.0) < 1e-3))
    assert bool(jnp.all(jnp.abs(jnp.sum(attn_w, axis=-1) - 1.0) < 1e-3))

    # Exact single-call equivalent of AttnDecoderRNN.forward (batch 1, one step).
    lp1, h1, aw1 = attn_decoder_forward(
        jnp.array(5, jnp.int32), jnp.zeros((1, 1, H), jnp.float32), encoder_outputs, kp)
    jax.block_until_ready((lp1, h1, aw1))
    assert lp1.shape == (1, V) and h1.shape == (1, 1, H) and aw1.shape == (1, L)
    assert abs(float(jnp.sum(jnp.exp(lp1))) - 1.0) < 1e-3

    print("KERNEL_OK")
</pallas_src>

<mosaic_0001>
module attributes {stable_mosaic.version = 11 : i64} {
  func.func @_attn_decoder_kernel(%arg0: i32, %arg1: memref<1x8x128xf32, #tpu.memory_space<vmem>>, %arg2: memref<8x128xf32, #tpu.memory_space<vmem>>, %arg3: memref<128x128xf32, #tpu.memory_space<vmem>>, %arg4: memref<128x128xbf16, #tpu.memory_space<vmem>>, %arg5: memref<128x128xbf16, #tpu.memory_space<vmem>>, %arg6: memref<1x128xf32, #tpu.memory_space<vmem>>, %arg7: memref<128x128xbf16, #tpu.memory_space<vmem>>, %arg8: memref<128x128xbf16, #tpu.memory_space<vmem>>, %arg9: memref<1x128xf32, #tpu.memory_space<vmem>>, %arg10: memref<128x384xbf16, #tpu.memory_space<vmem>>, %arg11: memref<128x384xbf16, #tpu.memory_space<vmem>>, %arg12: memref<1x384xf32, #tpu.memory_space<vmem>>, %arg13: memref<1x384xf32, #tpu.memory_space<vmem>>, %arg14: memref<128x128xbf16, #tpu.memory_space<vmem>>, %arg15: memref<1x128xf32, #tpu.memory_space<vmem>>, %arg16: memref<1x8x128xf32, #tpu.memory_space<vmem>>, %arg17: memref<1x8x128xf32, #tpu.memory_space<vmem>>, %arg18: memref<8x128xf32, #tpu.memory_space<vmem>>, %arg19: memref<8x128xf32, #tpu.memory_space<vmem>>) attributes {dimension_semantics = [#tpu.dimension_semantics<arbitrary>], iteration_bounds = array<i64: 7>, scalar_prefetch = 0 : i64, scratch_operands = 1 : i64, tpu.core_type = #tpu.core_type<tc>, window_params = [{transform_indices = @transform_0, window_bounds = array<i64: 1, 8, 128>}, {pipeline_mode = #tpu.pipeline_mode<synchronous>, transform_indices = @transform_1, window_bounds = array<i64: 8, 128>}, {pipeline_mode = #tpu.pipeline_mode<synchronous>, transform_indices = @transform_2, window_bounds = array<i64: 128, 128>}, {pipeline_mode = #tpu.pipeline_mode<synchronous>, transform_indices = @transform_3, window_bounds = array<i64: 128, 128>}, {pipeline_mode = #tpu.pipeline_mode<synchronous>, transform_indices = @transform_4, window_bounds = array<i64: 128, 128>}, {pipeline_mode = #tpu.pipeline_mode<synchronous>, transform_indices = @transform_5, window_bounds = array<i64: 1, 128>}, {pipeline_mode = #tpu.pipeline_mode<synchronous>, transform_indices = @transform_6, window_bounds = array<i64: 128, 128>}, {pipeline_mode = #tpu.pipeline_mode<synchronous>, transform_indices = @transform_7, window_bounds = array<i64: 128, 128>}, {pipeline_mode = #tpu.pipeline_mode<synchronous>, transform_indices = @transform_8, window_bounds = array<i64: 1, 128>}, {pipeline_mode = #tpu.pipeline_mode<synchronous>, transform_indices = @transform_9, window_bounds = array<i64: 128, 384>}, {pipeline_mode = #tpu.pipeline_mode<synchronous>, transform_indices = @transform_10, window_bounds = array<i64: 128, 384>}, {pipeline_mode = #tpu.pipeline_mode<synchronous>, transform_indices = @transform_11, window_bounds = array<i64: 1, 384>}, {pipeline_mode = #tpu.pipeline_mode<synchronous>, transform_indices = @transform_12, window_bounds = array<i64: 1, 384>}, {pipeline_mode = #tpu.pipeline_mode<synchronous>, transform_indices = @transform_13, window_bounds = array<i64: 128, 128>}, {pipeline_mode = #tpu.pipeline_mode<synchronous>, transform_indices = @transform_14, window_bounds = array<i64: 1, 128>}, {transform_indices = @transform_15, window_bounds = array<i64: 1, 8, 128>}, {transform_indices = @transform_16, window_bounds = array<i64: 1, 8, 128>}, {pipeline_mode = #tpu.pipeline_mode<synchronous>, transform_indices = @transform_17, window_bounds = array<i64: 8, 128>}]} {
    %c0_i32 = arith.constant 0 : i32
    %0 = arith.cmpi eq, %arg0, %c0_i32 : i32
    %1 = arith.extui %0 : i1 to i32
    %c0_i32_0 = arith.constant 0 : i32
    %2 = arith.cmpi ne, %1, %c0_i32_0 : i32
    scf.if %2 {
      %c0_56 = arith.constant 0 : index
      %c0_57 = arith.constant 0 : index
      %99 = vector.load %arg2[%c0_56, %c0_57] : memref<8x128xf32, #tpu.memory_space<vmem>>, vector<8x128xf32>
      %c0_58 = arith.constant 0 : index
      %c0_59 = arith.constant 0 : index
      %100 = vector.load %arg19[%c0_58, %c0_59] : memref<8x128xf32, #tpu.memory_space<vmem>>, vector<8x128xf32>
      tpu.vector_store %arg19[%c0_58, %c0_59], %99 {strides = array<i32>} : memref<8x128xf32, #tpu.memory_space<vmem>>, vector<8x128xf32>,
    } else {
    }
    %c0 = arith.constant 0 : index
    %c0_1 = arith.constant 0 : index
    %3 = vector.load %arg19[%c0, %c0_1] : memref<8x128xf32, #tpu.memory_space<vmem>>, vector<8x128xf32>
    %c0_2 = arith.constant 0 : index
    %c0_3 = arith.constant 0 : index
    %c0_4 = arith.constant 0 : index
    %4 = vector.load %arg1[%c0_2, %c0_3, %c0_4] : memref<1x8x128xf32, #tpu.memory_space<vmem>>, vector<1x8x128xf32>
    %5 = vector.shape_cast %4 : vector<1x8x128xf32> to vector<8x128xf32>
    %6 = arith.truncf %5 : vector<8x128xf32> to vector<8x128xbf16>
    %7 = arith.truncf %3 : vector<8x128xf32> to vector<8x128xbf16>
    %c0_5 = arith.constant 0 : index
    %c0_6 = arith.constant 0 : index
    %8 = vector.load %arg4[%c0_5, %c0_6] : memref<128x128xbf16, #tpu.memory_space<vmem>>, vector<128x128xbf16>
    %cst = arith.constant dense<0.000000e+00> : vector<8x128xf32>
    %9 = tpu.matmul %6, %8, %cst {dimension_numbers = #tpu.dot_dimension_numbers<[1], [0], [0], [1], [0, 0, 1, 1], [], []>} : vector<8x128xbf16>, vector<128x128xbf16>, vector<8x128xf32> -> vector<8x128xf32>
    %c0_7 = arith.constant 0 : index
    %c0_8 = arith.constant 0 : index
    %10 = vector.load %arg5[%c0_7, %c0_8] : memref<128x128xbf16, #tpu.memory_space<vmem>>, vector<128x128xbf16>
    %cst_9 = arith.constant dense<0.000000e+00> : vector<8x128xf32>
    %11 = tpu.matmul %7, %10, %cst_9 {dimension_numbers = #tpu.dot_dimension_numbers<[1], [0], [0], [1], [0, 0, 1, 1], [], []>} : vector<8x128xbf16>, vector<128x128xbf16>, vector<8x128xf32> -> vector<8x128xf32>
    %12 = arith.addf %9, %11 : vector<8x128xf32>
    %c0_10 = arith.constant 0 : index
    %c0_11 = arith.constant 0 : index
    %13 = vector.load %arg6[%c0_10, %c0_11] : memref<1x128xf32, #tpu.memory_space<vmem>>, vector<1x128xf32>
    %14 = vector.broadcast %13 : vector<1x128xf32> to vector<8x128xf32>
    %15 = arith.addf %12, %14 : vector<8x128xf32>
    %cst_12 = arith.constant dense<0xFF800000> : vector<8xf32>
    %16 = vector.multi_reduction <maximumf>, %15, %cst_12 [1] : vector<8x128xf32> to vector<8xf32>
    %17 = vector.shape_cast %16 : vector<8xf32> to vector<8x1xf32>
    %18 = vector.broadcast %17 : vector<8x1xf32> to vector<8x128xf32>
    %19 = arith.subf %15, %18 : vector<8x128xf32>
    %20 = math.exp %19 : vector<8x128xf32>
    %cst_13 = arith.constant dense<0.000000e+00> : vector<8xf32>
    %21 = vector.multi_reduction <add>, %20, %cst_13 [1] : vector<8x128xf32> to vector<8xf32>
    %22 = vector.shape_cast %21 : vector<8xf32> to vector<8x1xf32>
    %23 = vector.broadcast %22 : vector<8x1xf32> to vector<8x128xf32>
    %24 = arith.divf %20, %23 : vector<8x128xf32>
    %c0_14 = arith.constant 0 : index
    %c0_15 = arith.constant 0 : index
    %c0_16 = arith.constant 0 : index
    %25 = vector.load %arg17[%c0_14, %c0_15, %c0_16] : memref<1x8x128xf32, #tpu.memory_space<vmem>>, vector<1x8x128xf32>
    %26 = vector.shape_cast %25 : vector<1x8x128xf32> to vector<8x128xf32>
    %27 = vector.shape_cast %24 : vector<8x128xf32> to vector<1x8x128xf32>
    tpu.vector_store %arg17[%c0_14, %c0_15, %c0_16], %27 {strides = array<i32>} : memref<1x8x128xf32, #tpu.memory_space<vmem>>, vector<1x8x128xf32>,
    %c0_17 = arith.constant 0 : index
    %c0_18 = arith.constant 0 : index
    %28 = vector.load %arg3[%c0_17, %c0_18] : memref<128x128xf32, #tpu.memory_space<vmem>>, vector<128x128xf32>
    %cst_19 = arith.constant dense<0.000000e+00> : vector<8x128xf32>
    %29 = tpu.matmul %24, %28, %cst_19 {dimension_numbers = #tpu.dot_dimension_numbers<[1], [0], [0], [1], [0, 0, 1, 1], [], []>} : vector<8x128xf32>, vector<128x128xf32>, vector<8x128xf32> -> vector<8x128xf32>
    %c0_20 = arith.constant 0 : index
    %c0_21 = arith.constant 0 : index
    %30 = vector.load %arg7[%c0_20, %c0_21] : memref<128x128xbf16, #tpu.memory_space<vmem>>, vector<128x128xbf16>
    %cst_22 = arith.constant dense<0.000000e+00> : vector<8x128xf32>
    %31 = tpu.matmul %6, %30, %cst_22 {dimension_numbers = #tpu.dot_dimension_numbers<[1], [0], [0], [1], [0, 0, 1, 1], [], []>} : vector<8x128xbf16>, vector<128x128xbf16>, vector<8x128xf32> -> vector<8x128xf32>
    %32 = arith.truncf %29 : vector<8x128xf32> to vector<8x128xbf16>
    %c0_23 = arith.constant 0 : index
    %c0_24 = arith.constant 0 : index
    %33 = vector.load %arg8[%c0_23, %c0_24] : memref<128x128xbf16, #tpu.memory_space<vmem>>, vector<128x128xbf16>
    %cst_25 = arith.constant dense<0.000000e+00> : vector<8x128xf32>
    %34 = tpu.matmul %32, %33, %cst_25 {dimension_numbers = #tpu.dot_dimension_numbers<[1], [0], [0], [1], [0, 0, 1, 1], [], []>} : vector<8x128xbf16>, vector<128x128xbf16>, vector<8x128xf32> -> vector<8x128xf32>
    %35 = arith.addf %31, %34 : vector<8x128xf32>
    %c0_26 = arith.constant 0 : index
    %c0_27 = arith.constant 0 : index
    %36 = vector.load %arg9[%c0_26, %c0_27] : memref<1x128xf32, #tpu.memory_space<vmem>>, vector<1x128xf32>
    %37 = vector.broadcast %36 : vector<1x128xf32> to vector<8x128xf32>
    %38 = arith.addf %35, %37 : vector<8x128xf32>
    %cst_28 = arith.constant 0.000000e+00 : f32
    %39 = vector.broadcast %cst_28 : f32 to vector<8x128xf32>
    %40 = arith.maximumf %38, %39 : vector<8x128xf32>
    %41 = arith.truncf %40 : vector<8x128xf32> to vector<8x128xbf16>
    %c0_29 = arith.constant 0 : index
    %c0_30 = arith.constant 0 : index
    %42 = vector.load %arg10[%c0_29, %c0_30] : memref<128x384xbf16, #tpu.memory_space<vmem>>, vector<128x384xbf16>
    %cst_31 = arith.constant dense<0.000000e+00> : vector<8x384xf32>
    %43 = tpu.matmul %41, %42, %cst_31 {dimension_numbers = #tpu.dot_dimension_numbers<[1], [0], [0], [1], [0, 0, 1, 1], [], []>} : vector<8x128xbf16>, vector<128x384xbf16>, vector<8x384xf32> -> vector<8x384xf32>
    %c0_32 = arith.constant 0 : index
    %c0_33 = arith.constant 0 : index
    %44 = vector.load %arg12[%c0_32, %c0_33] : memref<1x384xf32, #tpu.memory_space<vmem>>, vector<1x384xf32>
    %45 = vector.broadcast %44 : vector<1x384xf32> to vector<8x384xf32>
    %46 = arith.addf %43, %45 : vector<8x384xf32>
    %c0_34 = arith.constant 0 : index
    %c0_35 = arith.constant 0 : index
    %47 = vector.load %arg11[%c0_34, %c0_35] : memref<128x384xbf16, #tpu.memory_space<vmem>>, vector<128x384xbf16>
    %cst_36 = arith.constant dense<0.000000e+00> : vector<8x384xf32>
    %48 = tpu.matmul %7, %47, %cst_36 {dimension_numbers = #tpu.dot_dimension_numbers<[1], [0], [0], [1], [0, 0, 1, 1], [], []>} : vector<8x128xbf16>, vector<128x384xbf16>, vector<8x384xf32> -> vector<8x384xf32>
    %c0_37 = arith.constant 0 : index
    %c0_38 = arith.constant 0 : index
    %49 = vector.load %arg13[%c0_37, %c0_38] : memref<1x384xf32, #tpu.memory_space<vmem>>, vector<1x384xf32>
    %50 = vector.broadcast %49 : vector<1x384xf32> to vector<8x384xf32>
    %51 = arith.addf %48, %50 : vector<8x384xf32>
    %52 = vector.extract_strided_slice %46 {offsets = [0, 0], sizes = [8, 128], strides = [1, 1]} : vector<8x384xf32> to vector<8x128xf32>
    %53 = vector.extract_strided_slice %51 {offsets = [0, 0], sizes = [8, 128], strides = [1, 1]} : vector<8x384xf32> to vector<8x128xf32>
    %54 = arith.addf %52, %53 : vector<8x128xf32>
    %55 = arith.negf %54 : vector<8x128xf32>
    %56 = math.exp %55 : vector<8x128xf32>
    %cst_39 = arith.constant 1.000000e+00 : f32
    %57 = vector.broadcast %cst_39 : f32 to vector<8x128xf32>
    %58 = arith.addf %57, %56 : vector<8x128xf32>
    %59 = arith.divf %57, %58 : vector<8x128xf32>
    %60 = vector.extract_strided_slice %46 {offsets = [0, 128], sizes = [8, 128], strides = [1, 1]} : vector<8x384xf32> to vector<8x128xf32>
    %61 = vector.extract_strided_slice %51 {offsets = [0, 128], sizes = [8, 128], strides = [1, 1]} : vector<8x384xf32> to vector<8x128xf32>
    %62 = arith.addf %60, %61 : vector<8x128xf32>
    %63 = arith.negf %62 : vector<8x128xf32>
    %64 = math.exp %63 : vector<8x128xf32>
    %cst_40 = arith.constant 1.000000e+00 : f32
    %65 = vector.broadcast %cst_40 : f32 to vector<8x128xf32>
    %66 = arith.addf %65, %64 : vector<8x128xf32>
    %67 = arith.divf %65, %66 : vector<8x128xf32>
    %68 = vector.extract_strided_slice %46 {offsets = [0, 256], sizes = [8, 128], strides = [1, 1]} : vector<8x384xf32> to vector<8x128xf32>
    %69 = vector.extract_strided_slice %51 {offsets = [0, 256], sizes = [8, 128], strides = [1, 1]} : vector<8x384xf32> to vector<8x128xf32>
    %70 = arith.mulf %59, %69 : vector<8x128xf32>
    %71 = arith.addf %68, %70 : vector<8x128xf32>
    %72 = math.tanh %71 : vector<8x128xf32>
    %cst_41 = arith.constant 1.000000e+00 : f32
    %73 = vector.broadcast %cst_41 : f32 to vector<8x128xf32>
    %74 = arith.subf %73, %67 : vector<8x128xf32>
    %75 = arith.mulf %74, %72 : vector<8x128xf32>
    %76 = arith.mulf %67, %3 : vector<8x128xf32>
    %77 = arith.addf %75, %76 : vector<8x128xf32>
    %c0_42 = arith.constant 0 : index
    %c0_43 = arith.constant 0 : index
    %78 = vector.load %arg19[%c0_42, %c0_43] : memref<8x128xf32, #tpu.memory_space<vmem>>, vector<8x128xf32>
    tpu.vector_store %arg19[%c0_42, %c0_43], %77 {strides = array<i32>} : memref<8x128xf32, #tpu.memory_space<vmem>>, vector<8x128xf32>,
    %c0_44 = arith.constant 0 : index
    %c0_45 = arith.constant 0 : index
    %79 = vector.load %arg18[%c0_44, %c0_45] : memref<8x128xf32, #tpu.memory_space<vmem>>, vector<8x128xf32>
    tpu.vector_store %arg18[%c0_44, %c0_45], %77 {strides = array<i32>} : memref<8x128xf32, #tpu.memory_space<vmem>>, vector<8x128xf32>,
    %80 = arith.truncf %77 : vector<8x128xf32> to vector<8x128xbf16>
    %c0_46 = arith.constant 0 : index
    %c0_47 = arith.constant 0 : index
    %81 = vector.load %arg14[%c0_46, %c0_47] : memref<128x128xbf16, #tpu.memory_space<vmem>>, vector<128x128xbf16>
    %cst_48 = arith.constant dense<0.000000e+00> : vector<8x128xf32>
    %82 = tpu.matmul %80, %81, %cst_48 {dimension_numbers = #tpu.dot_dimension_numbers<[1], [0], [0], [1], [0, 0, 1, 1], [], []>} : vector<8x128xbf16>, vector<128x128xbf16>, vector<8x128xf32> -> vector<8x128xf32>
    %c0_49 = arith.constant 0 : index
    %c0_50 = arith.constant 0 : index
    %83 = vector.load %arg15[%c0_49, %c0_50] : memref<1x128xf32, #tpu.memory_space<vmem>>, vector<1x128xf32>
    %84 = vector.broadcast %83 : vector<1x128xf32> to vector<8x128xf32>
    %85 = arith.addf %82, %84 : vector<8x128xf32>
    %cst_51 = arith.constant dense<0xFF800000> : vector<8xf32>
    %86 = vector.multi_reduction <maximumf>, %85, %cst_51 [1] : vector<8x128xf32> to vector<8xf32>
    %87 = vector.shape_cast %86 : vector<8xf32> to vector<8x1xf32>
    %88 = vector.broadcast %87 : vector<8x1xf32> to vector<8x128xf32>
    %89 = arith.subf %85, %88 : vector<8x128xf32>
    %90 = math.exp %89 : vector<8x128xf32>
    %cst_52 = arith.constant dense<0.000000e+00> : vector<8xf32>
    %91 = vector.multi_reduction <add>, %90, %cst_52 [1] : vector<8x128xf32> to vector<8xf32>
    %92 = vector.shape_cast %91 : vector<8xf32> to vector<8x1xf32>
    %93 = math.log %92 : vector<8x1xf32>
    %94 = vector.broadcast %93 : vector<8x1xf32> to vector<8x128xf32>
    %95 = arith.subf %89, %94 : vector<8x128xf32>
    %c0_53 = arith.constant 0 : index
    %c0_54 = arith.constant 0 : index
    %c0_55 = arith.constant 0 : index
    %96 = vector.load %arg16[%c0_53, %c0_54, %c0_55] : memref<1x8x128xf32, #tpu.memory_space<vmem>>, vector<1x8x128xf32>
    %97 = vector.shape_cast %96 : vector<1x8x128xf32> to vector<8x128xf32>
    %98 = vector.shape_cast %95 : vector<8x128xf32> to vector<1x8x128xf32>
    tpu.vector_store %arg16[%c0_53, %c0_54, %c0_55], %98 {strides = array<i32>} : memref<1x8x128xf32, #tpu.memory_space<vmem>>, vector<1x8x128xf32>,
    return
  }
  func.func @transform_0(%arg0: i32) -> (i32, i32, i32) {
    %c0_i32 = arith.constant 0 : i32
    %c0_i32_0 = arith.constant 0 : i32
    %c0_i32_1 = arith.constant 0 : i32
    return %arg0, %c0_i32, %c0_i32_0 : i32, i32, i32
  }
  func.func @transform_1(%arg0: i32) -> (i32, i32) {
    %c0_i32 = arith.constant 0 : i32
    %c0_i32_0 = arith.constant 0 : i32
    %c0_i32_1 = arith.constant 0 : i32
    return %c0_i32, %c0_i32_0 : i32, i32
  }
  func.func @transform_2(%arg0: i32) -> (i32, i32) {
    %c0_i32 = arith.constant 0 : i32
    %c0_i32_0 = arith.constant 0 : i32
    %c0_i32_1 = arith.constant 0 : i32
    return %c0_i32, %c0_i32_0 : i32, i32
  }
  func.func @transform_3(%arg0: i32) -> (i32, i32) {
    %c0_i32 = arith.constant 0 : i32
    %c0_i32_0 = arith.constant 0 : i32
    %c0_i32_1 = arith.constant 0 : i32
    return %c0_i32, %c0_i32_0 : i32, i32
  }
  func.func @transform_4(%arg0: i32) -> (i32, i32) {
    %c0_i32 = arith.constant 0 : i32
    %c0_i32_0 = arith.constant 0 : i32
    %c0_i32_1 = arith.constant 0 : i32
    return %c0_i32, %c0_i32_0 : i32, i32
  }
  func.func @transform_5(%arg0: i32) -> (i32, i32) {
    %c0_i32 = arith.constant 0 : i32
    %c0_i32_0 = arith.constant 0 : i32
    %c0_i32_1 = arith.constant 0 : i32
    return %c0_i32, %c0_i32_0 : i32, i32
  }
  func.func @transform_6(%arg0: i32) -> (i32, i32) {
    %c0_i32 = arith.constant 0 : i32
    %c0_i32_0 = arith.constant 0 : i32
    %c0_i32_1 = arith.constant 0 : i32
    return %c0_i32, %c0_i32_0 : i32, i32
  }
  func.func @transform_7(%arg0: i32) -> (i32, i32) {
    %c0_i32 = arith.constant 0 : i32
    %c0_i32_0 = arith.constant 0 : i32
    %c0_i32_1 = arith.constant 0 : i32
    return %c0_i32, %c0_i32_0 : i32, i32
  }
  func.func @transform_8(%arg0: i32) -> (i32, i32) {
    %c0_i32 = arith.constant 0 : i32
    %c0_i32_0 = arith.constant 0 : i32
    %c0_i32_1 = arith.constant 0 : i32
    return %c0_i32, %c0_i32_0 : i32, i32
  }
  func.func @transform_9(%arg0: i32) -> (i32, i32) {
    %c0_i32 = arith.constant 0 : i32
    %c0_i32_0 = arith.constant 0 : i32
    %c0_i32_1 = arith.constant 0 : i32
    return %c0_i32, %c0_i32_0 : i32, i32
  }
  func.func @transform_10(%arg0: i32) -> (i32, i32) {
    %c0_i32 = arith.constant 0 : i32
    %c0_i32_0 = arith.constant 0 : i32
    %c0_i32_1 = arith.constant 0 : i32
    return %c0_i32, %c0_i32_0 : i32, i32
  }
  func.func @transform_11(%arg0: i32) -> (i32, i32) {
    %c0_i32 = arith.constant 0 : i32
    %c0_i32_0 = arith.constant 0 : i32
    %c0_i32_1 = arith.constant 0 : i32
    return %c0_i32, %c0_i32_0 : i32, i32
  }
  func.func @transform_12(%arg0: i32) -> (i32, i32) {
    %c0_i32 = arith.constant 0 : i32
    %c0_i32_0 = arith.constant 0 : i32
    %c0_i32_1 = arith.constant 0 : i32
    return %c0_i32, %c0_i32_0 : i32, i32
  }
  func.func @transform_13(%arg0: i32) -> (i32, i32) {
    %c0_i32 = arith.constant 0 : i32
    %c0_i32_0 = arith.constant 0 : i32
    %c0_i32_1 = arith.constant 0 : i32
    return %c0_i32, %c0_i32_0 : i32, i32
  }
  func.func @transform_14(%arg0: i32) -> (i32, i32) {
    %c0_i32 = arith.constant 0 : i32
    %c0_i32_0 = arith.constant 0 : i32
    %c0_i32_1 = arith.constant 0 : i32
    return %c0_i32, %c0_i32_0 : i32, i32
  }
  func.func @transform_15(%arg0: i32) -> (i32, i32, i32) {
    %c0_i32 = arith.constant 0 : i32
    %c0_i32_0 = arith.constant 0 : i32
    %c0_i32_1 = arith.constant 0 : i32
    return %arg0, %c0_i32, %c0_i32_0 : i32, i32, i32
  }
  func.func @transform_16(%arg0: i32) -> (i32, i32, i32) {
    %c0_i32 = arith.constant 0 : i32
    %c0_i32_0 = arith.constant 0 : i32
    %c0_i32_1 = arith.constant 0 : i32
    return %arg0, %c0_i32, %c0_i32_0 : i32, i32, i32
  }
  func.func @transform_17(%arg0: i32) -> (i32, i32) {
    %c0_i32 = arith.constant 0 : i32
    %c0_i32_0 = arith.constant 0 : i32
    %c0_i32_1 = arith.constant 0 : i32
    return %c0_i32, %c0_i32_0 : i32, i32
  }
}

</mosaic_0001>

<bundles_post_ra>
// kernel: tpu_custom_call.1
= control target key start
LH: loop header
LB: loop body
LE: loop exit
PB: predicated region body
PF: predicated region fallthrough
CT: control target
= control target key end

     0   :  { %s3954_s0 = inlined_call_operand.hbm [shape: f32[7,8,128], index: 0, kind: input, shape index: {}]   ;;  %s3955_s1 = inlined_call_operand.hbm [shape: f32[8,128], index: 1, kind: input, shape index: {}]   ;;  %s3956_s2 = inlined_call_operand.hbm [shape: f32[128,128], index: 2, kind: input, shape index: {}]   ;;  %s3957_s3 = inlined_call_operand.hbm [shape: bf16[128,128], index: 3, kind: input, shape index: {}]   ;;  %s3958_s4 = inlined_call_operand.hbm [shape: bf16[128,128], index: 4, kind: input, shape index: {}]   ;;  %s3959_s5 = inlined_call_operand.vmem [shape: f32[1,128], index: 5, kind: input, shape index: {}]   ;;  %s3960_s6 = inlined_call_operand.hbm [shape: bf16[128,128], index: 6, kind: input, shape index: {}]   ;;  %s3961_s7 = inlined_call_operand.hbm [shape: bf16[128,128], index: 7, kind: input, shape index: {}]   ;;  %s3962_s8 = inlined_call_operand.vmem [shape: f32[1,128], index: 8, kind: input, shape index: {}]   ;;  %s3963_s9 = inlined_call_operand.hbm [shape: bf16[128,384], index: 9, kind: input, shape index: {}]   ;;  %s3964_s10 = inlined_call_operand.hbm [shape: bf16[128,384], index: 10, kind: input, shape index: {}]   ;;  %s3965_s11 = inlined_call_operand.vmem [shape: f32[1,384], index: 11, kind: input, shape index: {}]   ;;  %s3966_s12 = inlined_call_operand.vmem [shape: f32[1,384], index: 12, kind: input, shape index: {}]   ;;  %s3967_s13 = inlined_call_operand.hbm [shape: bf16[128,128], index: 13, kind: input, shape index: {}]   ;;  %s3968_s14 = inlined_call_operand.vmem [shape: f32[1,128], index: 14, kind: input, shape index: {}]   ;;  %s3969_s15 = inlined_call_operand.hbm [shape: f32[7,8,128], index: 15, kind: output, shape index: {0}]   ;;  %s3970_s16 = inlined_call_operand.hbm [shape: f32[7,8,128], index: 16, kind: output, shape index: {1}]   ;;  %s3971_s17 = inlined_call_operand.hbm [shape: f32[8,128], index: 17, kind: output, shape index: {2}]  }
   0x1   :  { %3990 = sst [smem:[#allocation33_spill]] %s3954_s0 }
   0x2   :  { %3991 = sst [smem:[#allocation34_spill]] %s3955_s1 }
   0x3   :  { %3992 = sst [smem:[#allocation35_spill]] %s3956_s2 }
   0x4   :  { %3993 = sst [smem:[#allocation36_spill]] %s3957_s3 }
   0x5   :  { %3994 = sst [smem:[#allocation37_spill]] %s3960_s6 }
   0x6   :  { %3995 = sst [smem:[#allocation38_spill]] %s3963_s9 }
   0x7   :  { %3996 = sst [smem:[#allocation39_spill]] %s3965_s11 }
   0x8   :  { %3997 = sst [smem:[#allocation40_spill]] %s3966_s12 }
   0x9   :  { %3998 = sst [smem:[#allocation41_spill]] %s3968_s14 }
   0xa   :  { %3999 = sst [smem:[#allocation42_spill]] %s3969_s15 }
   0xb   :  { %4000 = sst [smem:[#allocation43_spill]] %s3970_s16 }
   0xc   :  { %4001 = sst [smem:[#allocation44_spill]] %s3971_s17 }
   0xd   :  { %23 = vsyncpa [#allocation4], 0 }
   0xe   :  { %25 = vsyncpa [#allocation4 + $0x1], 0 }
   0xf   :  { %26 = vsyncpa [#allocation7], 0 }
  0x10   :  { %27 = vsyncpa [#allocation10], 0 }
  0x11   :  { %28 = vsyncpa [#allocation13], 0 }
  0x12   :  { %29 = vsyncpa [#allocation16], 0 }
  0x13   :  { %30 = vsyncpa [#allocation19], 0 }
  0x14   :  { %31 = vsyncpa [#allocation5], 0 }
  0x15   :  { %33 = vsyncpa [#allocation5 + $0x1], 0 }
  0x16   :  { %34 = vsyncpa [#allocation22], 0 }
  0x17   :  { %36 = vsyncpa [#allocation22 + $0x1], 0  ;;  %s3388_s24 = smov 0   ;;  %s3390_s25 = smov 0  }
  0x18   :  { %s3392_s26 = smov 0   ;;  %s3394_s27 = smov 0  }
  0x19 LB: > { %s3275_s28 = smov [#allocation6]   ;;  %s3409_s0 = sadd.s32 4294967295, %s3273_s27   ;;  %s3273_s27 = sphi %s3394_s27, %s4050_s27   ;;  %s3269_s26 = sphi %s3392_s26, %s4049_s26   ;;  %s3265_s25 = sphi %s3390_s25, %s4048_s25   ;;  %s3261_s24 = sphi %s3388_s24, %s4047_s24  }
  0x1a   : > { %s453_s29 = sshll.u32 %s3275_s28, 4  ;;  %p2147_p0 = scmp.ge.s32.totalorder %s3273_s27, 1  ;;  %s454_s29 = int_to_ptr.vmem [resolvable:$true] %s453_s29 }
  0x1b   : > { %p3977_p1 = scmp.eq.s32.totalorder %s3409_s0, 0  ;;  %p440_p2 = scmp.lt.s32.totalorder %s3273_s27, 8 }
  0x1c   : > { %s3276_s18 = smov [#allocation9]   ;;  %s3277_s20 = smov [#allocation12]  }
  0x1d   : > { %p3415_p4 = pnand %p2147_p0, %p440_p2  ;;  %s476_s19 = sshll.u32 %s3276_s18, 4  ;;  %s3421_s19 = int_to_ptr.vmem [resolvable:$true] %s476_s19 }
  0x1e   : > { %s505_s21 = sshll.u32 %s3277_s20, 4  ;;  %s4004_s28 = sld [smem:[#allocation34_spill]]  ;;  %s3429_s21 = int_to_ptr.vmem [resolvable:$true] %s505_s21 }
  0x1f   : > { %s4002_s30 = scalar_select %p3415_p4, 1, 0 }
  0x20   : > { %p2608_p5 = pneg %p3415_p4 }
  0x22   : > { %p3425_p6 = pnand %p2608_p5, %p3977_p1 }
  0x24   : > { %s2843_s15 = scalar_lea.hbm %s4004_s28, 128  ;;  %p3439_p8 = pneg %p3425_p6 }
  0x25   : > { %p2844_p7 = scmp.ne.s32.totalorder %s4004_s28, %s2843_s15  ;;  %p2850_p11 = scmp.lt.u32.totalorder %s2843_s15, %s4004_s28 }
  0x27   : > { %p2846_p9 = pnand %p3439_p8, %p2844_p7 }
  0x29   : > { %p2847_p10 = pneg %p2846_p9 }
  0x2b   : > { %p2852_p12 = pnand %p2850_p11, %p2847_p10 }
  0x2d   : > { %2855 = shalt.err (!%p2852_p12)
}
  0x2e   : > { %s2856_s22 = scalar_lea.vmem %s454_s29, 128  ;;  %p2864_p5 = scmp.lt.s32.totalorder %s454_s29, %s454_s29 }
  0x2f   : > { %p2857_p13 = scmp.ne.s32.totalorder %s454_s29, %s2856_s22  ;;  %p2865_p3 = scmp.lt.s32.totalorder %s2856_s22, %s2856_s22 }
  0x31   : > { %p2859_p0 = pnand %p2857_p13, %p3439_p8  ;;  %p2866_p1 = por %p2865_p3, %p2864_p5 }
  0x33   : > { %p2860_p2 = pneg %p2859_p0 }
  0x35   : > { %p2867_p4 = pnand %p2866_p1, %p2860_p2 }
  0x37   : > { %2870 = shalt.err (!%p2867_p4)
}
  0x38   : > { %2611 = dma.hbm_to_vmem [thread:$0]  (!%p3425_p6), %s4004_s28, 128, %s454_s29, [#allocation7]  }
  0x39   : > { %s4006_s3 = sld [smem:[#allocation36_spill]] }
  0x3f   : > { %s2871_s23 = scalar_lea.hbm %s4006_s3, 1024 }
  0x40   : > { %p2872_p7 = scmp.ne.s32.totalorder %s4006_s3, %s2871_s23  ;;  %p2878_p1 = scmp.lt.u32.totalorder %s2871_s23, %s4006_s3 }
  0x42   : > { %p2874_p9 = pnand %p2872_p7, %p3439_p8 }
  0x44   : > { %p2875_p3 = pneg %p2874_p9 }
  0x46   : > { %p2880_p4 = pnand %p2878_p1, %p2875_p3 }
  0x48   : > { %2883 = shalt.err (!%p2880_p4)
}
  0x49   : > { %s2884_s29 = scalar_lea.vmem %s3421_s19, 1024  ;;  %p2892_p13 = scmp.lt.s32.totalorder %s3421_s19, %s3421_s19 }
  0x4a   : > { %p2885_p10 = scmp.ne.s32.totalorder %s3421_s19, %s2884_s29  ;;  %p2893_p0 = scmp.lt.s32.totalorder %s2884_s29, %s2884_s29 }
  0x4c   : > { %p2887_p11 = pnand %p2885_p10, %p3439_p8  ;;  %p2894_p2 = por %p2893_p0, %p2892_p13 }
  0x4e   : > { %p2888_p12 = pneg %p2887_p11 }
  0x50   : > { %p2895_p5 = pnand %p2894_p2, %p2888_p12 }
  0x52   : > { %2898 = shalt.err (!%p2895_p5)
}
  0x53   : > { %s3980_s11 = smov 64   ;;  %s3982_s12 = smov 4  }
  0x54   : > { %2617 = dma.hbm_to_vmem [thread:$0]  (!%p3425_p6), %s4006_s3, 1024, %s3421_s19, [#allocation10], %s3980_s11, %s3980_s11, %s3982_s12  }
  0x55   : > { %s4007_s6 = sld [smem:[#allocation37_spill]] }
  0x5b   : > { %s2899_s23 = scalar_lea.hbm %s4007_s6, 1024 }
  0x5c   : > { %p2900_p7 = scmp.ne.s32.totalorder %s4007_s6, %s2899_s23  ;;  %p2906_p1 = scmp.lt.u32.totalorder %s2899_s23, %s4007_s6 }
  0x5e   : > { %p2902_p9 = pnand %p2900_p7, %p3439_p8 }
  0x60   : > { %p2903_p3 = pneg %p2902_p9 }
  0x62   : > { %p2908_p4 = pnand %p2906_p1, %p2903_p3 }
  0x64   : > { %2911 = shalt.err (!%p2908_p4)
}
  0x65   : > { %s2912_s19 = scalar_lea.vmem %s3429_s21, 1024  ;;  %p2920_p13 = scmp.lt.s32.totalorder %s3429_s21, %s3429_s21 }
  0x66   : > { %p2913_p10 = scmp.ne.s32.totalorder %s3429_s21, %s2912_s19  ;;  %p2921_p0 = scmp.lt.s32.totalorder %s2912_s19, %s2912_s19 }
  0x68   : > { %p2915_p11 = pnand %p2913_p10, %p3439_p8  ;;  %p2922_p2 = por %p2921_p0, %p2920_p13 }
  0x6a   : > { %p2916_p12 = pneg %p2915_p11 }
  0x6c   : > { %p2923_p5 = pnand %p2922_p2, %p2916_p12 }
  0x6e   : > { %2926 = shalt.err (!%p2923_p5)
}
  0x6f   : > { %2623 = dma.hbm_to_vmem [thread:$0]  (!%p3425_p6), %s4007_s6, 1024, %s3429_s21, [#allocation13], %s3980_s11, %s3980_s11, %s3982_s12  }
  0x70   : > { %s3280_s17 = smov [#allocation15]   ;;  %s4008_s9 = sld [smem:[#allocation38_spill]] }
  0x71   : > { %s534_s14 = sshll.u32 %s3280_s17, 4  ;;  %s535_s14 = int_to_ptr.vmem [resolvable:$true] %s534_s14 }
  0x76   : > { %s2927_s20 = scalar_lea.hbm %s4008_s9, 3072 }
  0x77   : > { %p2928_p7 = scmp.ne.s32.totalorder %s4008_s9, %s2927_s20  ;;  %p2934_p1 = scmp.lt.u32.totalorder %s2927_s20, %s4008_s9 }
  0x79   : > { %p2930_p9 = pnand %p2928_p7, %p3439_p8 }
  0x7b   : > { %p2931_p3 = pneg %p2930_p9 }
  0x7d   : > { %p2936_p4 = pnand %p2934_p1, %p2931_p3 }
  0x7f   : > { %2939 = shalt.err (!%p2936_p4)
}
  0x80   : > { %s2940_s21 = scalar_lea.vmem %s535_s14, 3072  ;;  %p2948_p13 = scmp.lt.s32.totalorder %s535_s14, %s535_s14 }
  0x81   : > { %p2941_p10 = scmp.ne.s32.totalorder %s535_s14, %s2940_s21  ;;  %p2949_p0 = scmp.lt.s32.totalorder %s2940_s21, %s2940_s21 }
  0x83   : > { %p2943_p11 = pnand %p2941_p10, %p3439_p8  ;;  %p2950_p2 = por %p2949_p0, %p2948_p13 }
  0x85   : > { %p2944_p12 = pneg %p2943_p11 }
  0x87   : > { %p2951_p5 = pnand %p2950_p2, %p2944_p12 }
  0x89   : > { %2954 = shalt.err (!%p2951_p5)
}
  0x8a   : > { %s3984_s28 = smov 192   ;;  %s3985_s16 = smov 12  }
  0x8b   : > { %2629 = dma.hbm_to_vmem [thread:$0]  (!%p3425_p6), %s4008_s9, 3072, %s535_s14, [#allocation16], %s3984_s28, %s3984_s28, %s3985_s16  }
  0x8c   : > { %s3283_s15 = smov [#allocation8]   ;;  %s4009_s2 = sld [smem:[#allocation35_spill]] }
  0x8d   : > { %s463_s23 = sshll.u32 %s3283_s15, 4  ;;  %s464_s23 = int_to_ptr.vmem [resolvable:$true] %s463_s23 }
  0x92   : > { %s2955_s29 = scalar_lea.hbm %s4009_s2, 2048 }
  0x93   : > { %p2956_p7 = scmp.ne.s32.totalorder %s4009_s2, %s2955_s29  ;;  %p2962_p1 = scmp.lt.u32.totalorder %s2955_s29, %s4009_s2 }
  0x95   : > { %p2958_p9 = pnand %p2956_p7, %p3439_p8 }
  0x97   : > { %p2959_p3 = pneg %p2958_p9 }
  0x99   : > { %p2964_p4 = pnand %p2962_p1, %p2959_p3 }
  0x9b   : > { %2967 = shalt.err (!%p2964_p4)
}
  0x9c   : > { %s2968_s14 = scalar_lea.vmem %s464_s23, 2048  ;;  %p2976_p13 = scmp.lt.s32.totalorder %s464_s23, %s464_s23 }
  0x9d   : > { %p2969_p10 = scmp.ne.s32.totalorder %s464_s23, %s2968_s14  ;;  %p2977_p0 = scmp.lt.s32.totalorder %s2968_s14, %s2968_s14 }
  0x9f   : > { %p2971_p11 = pnand %p2969_p10, %p3439_p8  ;;  %p2978_p2 = por %p2977_p0, %p2976_p13 }
  0xa1   : > { %p2972_p12 = pneg %p2971_p11 }
  0xa3   : > { %p2979_p5 = pnand %p2978_p2, %p2972_p12 }
  0xa5   : > { %2982 = shalt.err (!%p2979_p5)
}
  0xa6   : > { %s3284_s3 = smov 128   ;;  %s3285_s17 = smov 8  }
  0xa7   : > { %2614 = dma.hbm_to_vmem [thread:$0]  (!%p3425_p6), %s4009_s2, 2048, %s464_s23, [#allocation7], %s3284_s3, %s3284_s3, %s3285_s17  }
  0xa8   : > { %s3286_s15 = smov [#allocation11]   ;;  %s3287_s22 = smov [#allocation14]  }
  0xa9   : > { %s489_s20 = sshll.u32 %s3286_s15, 4  ;;  %s518_s29 = sshll.u32 %s3287_s22, 4  ;;  %s490_s20 = int_to_ptr.vmem [resolvable:$true] %s489_s20  ;;  %s519_s29 = int_to_ptr.vmem [resolvable:$true] %s518_s29 }
  0xaa   : > { %s2983_s14 = scalar_lea.hbm %s3958_s4, 1024 }
  0xab   : > { %p2984_p7 = scmp.ne.s32.totalorder %s3958_s4, %s2983_s14  ;;  %p2990_p1 = scmp.lt.u32.totalorder %s2983_s14, %s3958_s4 }
  0xad   : > { %p2986_p9 = pnand %p2984_p7, %p3439_p8 }
  0xaf   : > { %p2987_p3 = pneg %p2986_p9 }
  0xb1   : > { %p2992_p4 = pnand %p2990_p1, %p2987_p3 }
  0xb3   : > { %2995 = shalt.err (!%p2992_p4)
}
  0xb4   : > { %s2996_s23 = scalar_lea.vmem %s490_s20, 1024  ;;  %p3004_p13 = scmp.lt.s32.totalorder %s490_s20, %s490_s20 }
  0xb5   : > { %p2997_p10 = scmp.ne.s32.totalorder %s490_s20, %s2996_s23  ;;  %p3005_p0 = scmp.lt.s32.totalorder %s2996_s23, %s2996_s23 }
  0xb7   : > { %p2999_p11 = pnand %p2997_p10, %p3439_p8  ;;  %p3006_p2 = por %p3005_p0, %p3004_p13 }
  0xb9   : > { %p3000_p12 = pneg %p2999_p11 }
  0xbb   : > { %p3007_p5 = pnand %p3006_p2, %p3000_p12 }
  0xbd   : > { %3010 = shalt.err (!%p3007_p5)
}
  0xbe   : > { %s4010_s28 = smov 4   ;;  %s4011_s16 = smov 64  }
  0xbf   : > { %2620 = dma.hbm_to_vmem [thread:$0]  (!%p3425_p6), %s3958_s4, 1024, %s490_s20, [#allocation10], %s4011_s16, %s4011_s16, %s4010_s28  }
  0xc0   : > { %s3011_s11 = scalar_lea.hbm %s3961_s7, 1024 }
  0xc1   : > { %p3012_p7 = scmp.ne.s32.totalorder %s3961_s7, %s3011_s11  ;;  %p3018_p1 = scmp.lt.u32.totalorder %s3011_s11, %s3961_s7 }
  0xc3   : > { %p3014_p9 = pnand %p3012_p7, %p3439_p8 }
  0xc5   : > { %p3015_p3 = pneg %p3014_p9 }
  0xc7   : > { %p3020_p4 = pnand %p3018_p1, %p3015_p3 }
  0xc9   : > { %3023 = shalt.err (!%p3020_p4)
}
  0xca   : > { %s3024_s21 = scalar_lea.vmem %s519_s29, 1024  ;;  %p3032_p13 = scmp.lt.s32.totalorder %s519_s29, %s519_s29 }
  0xcb   : > { %p3025_p10 = scmp.ne.s32.totalorder %s519_s29, %s3024_s21  ;;  %p3033_p0 = scmp.lt.s32.totalorder %s3024_s21, %s3024_s21 }
  0xcd   : > { %p3027_p11 = pnand %p3025_p10, %p3439_p8  ;;  %p3034_p2 = por %p3033_p0, %p3032_p13 }
  0xcf   : > { %p3028_p12 = pneg %p3027_p11 }
  0xd1   : > { %p3035_p5 = pnand %p3034_p2, %p3028_p12 }
  0xd3   : > { %3038 = shalt.err (!%p3035_p5)
}
  0xd4   : > { %2626 = dma.hbm_to_vmem [thread:$0]  (!%p3425_p6), %s3961_s7, 1024, %s519_s29, [#allocation13], %s4011_s16, %s4011_s16, %s4010_s28  }
  0xd5   : > { %s3288_s23 = smov [#allocation17]   ;;  %s3289_s9 = smov [#allocation18]  }
  0xd6   : > { %s547_s6 = sshll.u32 %s3288_s23, 4  ;;  %s566_s3 = sshll.u32 %s3289_s9, 4  ;;  %s548_s6 = int_to_ptr.vmem [resolvable:$true] %s547_s6  ;;  %s567_s3 = int_to_ptr.vmem [resolvable:$true] %s566_s3 }
  0xd7   : > { %s3039_s12 = scalar_lea.hbm %s3964_s10, 3072 }
  0xd8   : > { %p3040_p7 = scmp.ne.s32.totalorder %s3964_s10, %s3039_s12  ;;  %p3046_p1 = scmp.lt.u32.totalorder %s3039_s12, %s3964_s10 }
  0xda   : > { %p3042_p9 = pnand %p3040_p7, %p3439_p8 }
  0xdc   : > { %p3043_p3 = pneg %p3042_p9 }
  0xde   : > { %p3048_p4 = pnand %p3046_p1, %p3043_p3 }
  0xe0   : > { %3051 = shalt.err (!%p3048_p4)
}
  0xe1   : > { %s3052_s29 = scalar_lea.vmem %s548_s6, 3072  ;;  %p3060_p13 = scmp.lt.s32.totalorder %s548_s6, %s548_s6 }
  0xe2   : > { %p3053_p10 = scmp.ne.s32.totalorder %s548_s6, %s3052_s29  ;;  %p3061_p0 = scmp.lt.s32.totalorder %s3052_s29, %s3052_s29 }
  0xe4   : > { %p3055_p11 = pnand %p3053_p10, %p3439_p8  ;;  %p3062_p2 = por %p3061_p0, %p3060_p13 }
  0xe6   : > { %p3056_p12 = pneg %p3055_p11 }
  0xe8   : > { %p3063_p5 = pnand %p3062_p2, %p3056_p12 }
  0xea   : > { %3066 = shalt.err (!%p3063_p5)
}
  0xeb   : > { %s4012_s20 = smov 12   ;;  %s4013_s14 = smov 192  }
  0xec   : > { %2632 = dma.hbm_to_vmem [thread:$0]  (!%p3425_p6), %s3964_s10, 3072, %s548_s6, [#allocation16], %s4013_s14, %s4013_s14, %s4012_s20  }
  0xed   : > { %s3067_s12 = scalar_lea.hbm %s3967_s13, 1024 }
  0xee   : > { %p3068_p7 = scmp.ne.s32.totalorder %s3967_s13, %s3067_s12  ;;  %p3074_p1 = scmp.lt.u32.totalorder %s3067_s12, %s3967_s13 }
  0xf0   : > { %p3070_p9 = pnand %p3068_p7, %p3439_p8 }
  0xf2   : > { %p3071_p3 = pneg %p3070_p9 }
  0xf4   : > { %p3076_p4 = pnand %p3074_p1, %p3071_p3 }
  0xf6   : > { %3079 = shalt.err (!%p3076_p4)
}
  0xf7   : > { %s3080_s29 = scalar_lea.vmem %s567_s3, 1024  ;;  %p3088_p13 = scmp.lt.s32.totalorder %s567_s3, %s567_s3 }
  0xf8   : > { %p3081_p10 = scmp.ne.s32.totalorder %s567_s3, %s3080_s29  ;;  %p3089_p0 = scmp.lt.s32.totalorder %s3080_s29, %s3080_s29 }
  0xfa   : > { %p3083_p11 = pnand %p3081_p10, %p3439_p8  ;;  %p3090_p2 = por %p3089_p0, %p3088_p13 }
  0xfc   : > { %p3084_p12 = pneg %p3083_p11 }
  0xfe   : > { %p3091_p5 = pnand %p3090_p2, %p3084_p12 }
 0x100   : > { %3094 = shalt.err (!%p3091_p5)
}
 0x101   : > { %2635 = dma.hbm_to_vmem [thread:$0]  (!%p3425_p6), %s3967_s13, 1024, %s567_s3, [#allocation19], %s4011_s16, %s4011_s16, %s4010_s28  }
 0x102   : > { %s3988_s1 = sadd.s32 4294967294, %s3273_s27   ;;  %s3632_s18 = sadd.s32 1, %s3273_s27  }
 0x103   : > { %s49_s14 = sadd.s32 1, %s3269_s26  ;;  %s46_s23 = ssub.s32 %s3273_s27, %s3632_s18 }
 0x104   : > { %p56_p8 = scmp.ne.s32.totalorder %s3269_s26, %s3265_s25  ;;  %p47_p7 = scmp.eq.s32.totalorder %s46_s23, 0 }
 0x105   : > { %p57_p9 = scmp.eq.s32.totalorder %s3273_s27, 0  ;;  %p62_p3 = scmp.ne.s32.totalorder %s3265_s25, %s3261_s24 }
 0x106   : > { %p3986_p1 = scmp.eq.s32.totalorder %s3409_s0, 6  ;;  %p4014_p10 = scmp.eq.s32.totalorder %s3409_s0, 0 }
 0x107   : > { %s3644_s9 = scalar_select %p47_p7, %s3269_s26, %s49_s14  }
 0x108   : > { %p58_p4 = por %p57_p9, %p56_p8  ;;  %p3648_p11 = por %p4014_p10, %p62_p3 }
 0x109   : > { %p3654_p6 = por %p3986_p1, %p56_p8  ;;  %p386_p12 = scmp.eq.s32.totalorder %s3988_s1, 6 }
 0x10a   : > { %p2656_p13 = scmp.lt.s32.totalorder %s3273_s27, 7  ;;  %s583_s16 = sand.u32 1, %s3269_s26  }
 0x10b   : > { %s4016_s28 = scalar_select %p3654_p6, 1, 0 }
 0x10c   : > { %p3662_p0 = por %p386_p12, %p62_p3  ;;  %s2158_s11 = sshll.u32 %s583_s16, 3 }
 0x10d   : > { %s2159_s12 = sshll.u32 %s3273_s27, 7  ;;  %s4018_s19 = sld [smem:[#allocation33_spill]] }
 0x10e   : > { %s4017_s3 = scalar_select %p3662_p0, 1, 0 }
 0x10f   : > { %s587_s29 = scalar_lea.vmem [#allocation3], %s2158_s11  ;;  %p3672_p2 = pnand %p2656_p13, %p58_p4 }
 0x110   : > { %s594_s6 = sshll.u32 %s587_s29, 4  ;;  %s584_s14 = scalar_lea.sflag [#allocation4], %s583_s16  ;;  %s3676_s6 = int_to_ptr.vmem [resolvable:$true] %s594_s6 }
 0x111   : > { %p3097_p8 = pneg %p3672_p2 }
 0x113   : > { %s3670_s21 = scalar_lea.hbm %s4018_s19, %s2159_s12  ;;  %s3100_s15 = scalar_lea.hbm %s4018_s19, 896 }
 0x114   : > { %s3095_s23 = scalar_lea.hbm %s3670_s21, 128  ;;  %p3101_p3 = scmp.lt.u32.totalorder %s3670_s21, %s4018_s19 }
 0x115   : > { %p3096_p5 = scmp.ne.s32.totalorder %s3670_s21, %s3095_s23  ;;  %p3102_p4 = scmp.lt.u32.totalorder %s3100_s15, %s3095_s23 }
 0x116   : > { %p3104_p12 = scmp.lt.u32.totalorder %s3095_s23, %s3670_s21 }
 0x117   : > { %p3098_p7 = pnand %p3097_p8, %p3096_p5  ;;  %p3103_p10 = por %p3102_p4, %p3101_p3 }
 0x119   : > { %p3099_p9 = pneg %p3098_p7  ;;  %p3105_p13 = por %p3104_p12, %p3103_p10 }
 0x11b   : > { %p3106_p1 = pnand %p3105_p13, %p3099_p9 }
 0x11d   : > { %3109 = shalt.err (!%p3106_p1)
}
 0x11e   : > { %s3110_s16 = scalar_lea.vmem %s3676_s6, 128  ;;  %s3290_s12 = smov [#allocation3]  }
 0x11f   : > { %p3111_p5 = scmp.ne.s32.totalorder %s3676_s6, %s3110_s16  ;;  %s3115_s11 = sshll.u32 %s3290_s12, 4  ;;  %s3116_s11 = int_to_ptr.vmem [resolvable:$false] %s3115_s11 }
 0x120   : > { %s3117_s22 = scalar_lea.vmem %s3116_s11, 256  ;;  %p3118_p6 = scmp.lt.s32.totalorder %s3676_s6, %s3116_s11 }
 0x121   : > { %p3113_p7 = pnand %p3111_p5, %p3097_p8  ;;  %p3119_p3 = scmp.lt.s32.totalorder %s3117_s22, %s3110_s16 }
 0x123   : > { %p3114_p0 = pneg %p3113_p7  ;;  %p3120_p4 = por %p3119_p3, %p3118_p6 }
 0x125   : > { %p3121_p10 = pnand %p3120_p4, %p3114_p0 }
 0x127   : > { %3124 = shalt.err (!%p3121_p10)
}
 0x128   : > { %2639 = dma.hbm_to_vmem [thread:$0]  (!%p3672_p2), %s3670_s21, 128, %s3676_s6, %s584_s14  }
 0x129   : > { %p4020_p1 = scmp.ne.s32.totalorder %s4002_s30, 0 }
 0x12a   : > { %s3706_s23 = sand.u32 (!%p4020_p1), 1, %s3265_s25  }
 0x12b   : > { %603 = sbr.rel (%p4020_p1) target bundleno = 2168 (0x878), region = 80  ;;  %s3709_s15 = sshll.u32 (!%p4020_p1), %s3706_s23, 3 }
 0x12c   : > { %s606_s29 = scalar_lea.sflag (!%p4020_p1), [#allocation4], %s3706_s23  ;;  %s609_s16 = scalar_lea.vmem (!%p4020_p1), [#allocation3], %s3709_s15 }
 0x132   : > { %3224 = dma.done.wait (%p3648_p11), %s606_s29, 128  }
 0x133   : > { %3226 = vsyncadd (%p3648_p11), %s606_s29, 4294967168  ;;  %p4021_p6 = scmp.eq.s32.totalorder %s3409_s0, 0 }
 0x135   : > { %3228 = dma.done.wait (%p4021_p6), [#allocation7], 2176   ;;  %p4022_p0 = pmov %p4021_p6 }
 0x137   : > { %3230 = vsyncadd (%p4022_p0), [#allocation7], 4294965120  ;;  %p4023_p2 = pmov %p4022_p0 }
 0x138   : > { %p4024_p8 = pmov %p4022_p0 }
 0x139   : > { %3232 = dma.done.wait (%p4023_p2), [#allocation10], 2048  }
 0x13a   : > { %3234 = vsyncadd (%p4024_p8), [#allocation10], 4294965248  ;;  %p4025_p9 = pmov %p4022_p0 }
 0x13b   : > { %p4026_p12 = pmov %p4022_p0 }
 0x13c   : > { %3236 = dma.done.wait (%p4025_p9), [#allocation13], 2048  }
 0x13d   : > { %3238 = vsyncadd (%p4026_p12), [#allocation13], 4294965248  ;;  %p4027_p11 = pmov %p4022_p0 }
 0x13e   : > { %p4028_p13 = pmov %p4022_p0 }
 0x13f   : > { %3240 = dma.done.wait (%p4027_p11), [#allocation16], 6144  }
 0x140   : > { %3242 = vsyncadd (%p4028_p13), [#allocation16], 4294961152  ;;  %p4029_p5 = pmov %p4022_p0 }
 0x141   : > { %p4030_p7 = pmov %p4022_p0 }
 0x142   : > { %3244 = dma.done.wait (%p4029_p5), [#allocation19], 1024  }
 0x143   : > { %3246 = vsyncadd (%p4030_p7), [#allocation19], 4294966272  ;;  %s698_s17 = scalar_lea.vmem [#allocation21], %s3709_s15  ;;  %p4031_p3 = scmp.ne.s32.totalorder %s3409_s0, 0 }
 0x144   : > { %v706_v0 = vld [vmem:[#allocation6] sm:$0xff] (!%p4031_p3) }
 0x145   : > { %705 = sbr.rel (%p4031_p3) target bundleno = 332 (0x14c), region = 124  ;;  %707 = vst [vmem:[#allocation2] sm:$0xff] (!%p4031_p3), %v706_v0 }
 0x14c PF: > { %v2721_v1 = vld [vmem:[#allocation11] sm:$0xff]   ;;  %v3291_v2 = vmov 0.0   ;;  %v2723_v4 = vld [vmem:[#allocation11 + $0x8] sm:$0xff]   ;;  %vm3292_vm0 = vmmov 0   ;;  %v2725_v6 = vld [vmem:[#allocation11 + $0x10] sm:$0xff]   ;;  %v3293_v36 = vmov 0.0|0.0  }
 0x14d   : > { %2355 = vmatprep.subr.bf16.mxu0 %v3291_v2  ;;  %2375 = vmatprep.subr.bf16.mxu1 %v3291_v2  ;;  %v2722_v3 = vld [vmem:[#allocation9] sm:$0xff]   ;;  %v2724_v5 = vld [vmem:[#allocation9 + $0x8] sm:$0xff]   ;;  %v2726_v7 = vld [vmem:[#allocation9 + $0x10] sm:$0xff]   ;;  %s4032_s22 = sld [smem:[#allocation40_spill]]  ;;  %s4033_s21 = sld [smem:[#allocation39_spill]] }
 0x14e   : > { %2356 = vmatpush3.bf16.msra.mxu0 %v2721_v1  ;;  %2371 = vmatprep.mubr.msk.bf16.mxu0 %vm3292_vm0, %v3291_v2  ;;  %v2727_v8 = vld [vmem:[#allocation11 + $0x18] sm:$0xff]   ;;  %v2729_v10 = vld [vmem:[#allocation11 + $0x20] sm:$0xff]   ;;  %v2731_v12 = vld [vmem:[#allocation11 + $0x28] sm:$0xff]   ;;  %s4034_s14 = sld [smem:[#allocation41_spill]]  ;;  %s1910_s12 = sand.u32 1, %s3409_s0  }
 0x14f   : > { %2376 = vmatpush3.bf16.msra.mxu1 %v2722_v3  ;;  %2357 = vmatprep.subr.bf16.mxu0 %v3291_v2  ;;  %v2728_v9 = vld [vmem:[#allocation9 + $0x18] sm:$0xff]   ;;  %v2730_v11 = vld [vmem:[#allocation9 + $0x20] sm:$0xff]   ;;  %v2732_v13 = vld [vmem:[#allocation9 + $0x28] sm:$0xff]   ;;  %s2269_s11 = sshll.u32 %s3409_s0, 7  ;;  %s1937_s6 = sshll.u32 %s698_s17, 4  ;;  %s1938_s6 = int_to_ptr.vmem [resolvable:$true] %s1937_s6 }
 0x150   : > { %2377 = vmatprep.subr.bf16.mxu1 %v3291_v2  ;;  %2391 = vmatprep.mubr.msk.bf16.mxu1 %vm3292_vm0, %v3291_v2  ;;  %v2733_v14 = vld [vmem:[#allocation11 + $0x30] sm:$0xff]   ;;  %v2735_v16 = vld [vmem:[#allocation11 + $0x38] sm:$0xff]   ;;  %v3759_v17 = vld [vmem:[#allocation2] sm:$0xff]  ;;  %s1911_s20 = scalar_lea.sflag [#allocation22], %s1910_s12  ;;  %p4036_p10 = scmp.ne.s32.totalorder %s4016_s28, 0 }
 0x151   : > { %v2734_v15 = vld [vmem:[#allocation9 + $0x30] sm:$0xff]   ;;  %v2736_v18 = vld [vmem:[#allocation9 + $0x38] sm:$0xff]   ;;  %v3767_v20 = vpack.c.bf16 %v3759_v17, %v3759_v17  ;;  %v2190_v25 = vld [vmem:[%s3959_s5] ss:$0 sm:$0xff]  ;;  %s3295_s1 = smov [#allocation21]  }
 0x152   : > { %2358 = vmatpush3.bf16.msra.mxu0 %v2723_v4  ;;  %v709_v19 = vld [vmem:[%s609_s16] sm:$0xff]  ;;  %v938_v33 = vld [vmem:[#allocation8] sm:$0xff]  ;;  %v941_v38 = vld [vmem:[#allocation8 + $0x18] sm:$0xff]  ;;  %s4035_s16 = sld [smem:[#allocation43_spill]]  ;;  %s3129_s30 = sshll.u32 %s3295_s1, 4  ;;  %s3130_s30 = int_to_ptr.vmem [resolvable:$false] %s3129_s30 }
 0x153   : > { %2378 = vmatpush3.bf16.msra.mxu1 %v2724_v5  ;;  %2359 = vmatprep.subr.bf16.mxu0 %v3291_v2  ;;  %v3769_v21 = vpack.c.bf16 %v709_v19, %v709_v19  ;;  %v939_v34 = vld [vmem:[#allocation8 + $0x8] sm:$0xff]  ;;  %v940_v35 = vld [vmem:[#allocation8 + $0x10] sm:$0xff]  ;;  %v942_v40 = vld [vmem:[#allocation8 + $0x20] sm:$0xff]  ;;  %s3131_s2 = scalar_lea.vmem %s3130_s30, 256  ;;  %p3132_p0 = scmp.lt.s32.totalorder %s1938_s6, %s3130_s30 }
 0x154   : > { %2379 = vmatprep.subr.bf16.mxu1 %v3291_v2  ;;  %v2531_v37 = vpack.c.bf16 %v939_v34, %v938_v33  ;;  %v2534_v39 = vpack.c.bf16 %v941_v38, %v940_v35  ;;  %v943_v41 = vld [vmem:[#allocation8 + $0x28] sm:$0xff]  ;;  %v944_v43 = vld [vmem:[#allocation8 + $0x30] sm:$0xff]  ;;  %v945_v44 = vld [vmem:[#allocation8 + $0x38] sm:$0xff] }
 0x155   : > { %v2537_v42 = vpack.c.bf16 %v943_v41, %v942_v40  ;;  %v2540_v45 = vpack.c.bf16 %v945_v44, %v944_v43  ;;  %v946_v46 = vld [vmem:[#allocation8 + $0x40] sm:$0xff]  ;;  %v947_v47 = vld [vmem:[#allocation8 + $0x48] sm:$0xff]  ;;  %v948_v53 = vld [vmem:[#allocation8 + $0x50] sm:$0xff] }
 0x156   : > { %2360 = vmatpush3.bf16.msra.mxu0 %v2725_v6  ;;  %v2543_v48 = vpack.c.bf16 %v947_v47, %v946_v46  ;;  %v949_v54 = vld [vmem:[#allocation8 + $0x58] sm:$0xff]  ;;  %v950_v56 = vld [vmem:[#allocation8 + $0x60] sm:$0xff]  ;;  %v951_v57 = vld [vmem:[#allocation8 + $0x68] sm:$0xff] }
 0x157   : > { %2380 = vmatpush3.bf16.msra.mxu1 %v2726_v7  ;;  %2361 = vmatprep.subr.bf16.mxu0 %v3291_v2  ;;  %v2546_v55 = vpack.c.bf16 %v949_v54, %v948_v53  ;;  %v2549_v58 = vpack.c.bf16 %v951_v57, %v950_v56  ;;  %v952_v59 = vld [vmem:[#allocation8 + $0x70] sm:$0xff]  ;;  %v953_v60 = vld [vmem:[#allocation8 + $0x78] sm:$0xff]  ;;  %v2738_v62 = vld [vmem:[#allocation14] sm:$0xff]  }
 0x158   : > { %2381 = vmatprep.subr.bf16.mxu1 %v3291_v2  ;;  %v2552_v61 = vpack.c.bf16 %v953_v60, %v952_v59  ;;  %v2740_v63 = vld [vmem:[#allocation14 + $0x8] sm:$0xff]   ;;  %v2742_v0 = vld [vmem:[#allocation14 + $0x10] sm:$0xff]   ;;  %v2744_v1 = vld [vmem:[#allocation14 + $0x18] sm:$0xff]  }
 0x159   : > { %v2746_v3 = vld [vmem:[#allocation14 + $0x20] sm:$0xff]   ;;  %v2748_v4 = vld [vmem:[#allocation14 + $0x28] sm:$0xff]   ;;  %v2750_v5 = vld [vmem:[#allocation14 + $0x30] sm:$0xff]  }
 0x15a   : > { %2362 = vmatpush3.bf16.msra.mxu0 %v2727_v8  ;;  %v2737_v8 = vld [vmem:[#allocation12] sm:$0xff]   ;;  %v2761_v34 = vld [vmem:[#allocation15 + $0x30] ss:$12 sps:$4 sm:$0xff]   ;;  %v2767_v35 = vld [vmem:[#allocation15 + $0x4c] ss:$12 sps:$4 sm:$0xff]  }
 0x15b   : > { %2382 = vmatpush3.bf16.msra.mxu1 %v2728_v9  ;;  %2363 = vmatprep.subr.bf16.mxu0 %v3291_v2  ;;  %v2755_v19 = vld [vmem:[#allocation15 + $0x4] ss:$12 sps:$4 sm:$0xff]   ;;  %v2763_v33 = vld [vmem:[#allocation15 + $0x34] ss:$12 sps:$4 sm:$0xff]  }
 0x15c   : > { %2383 = vmatprep.subr.bf16.mxu1 %v3291_v2  ;;  %v2769_v38 = vld [vmem:[#allocation15 + $0x60] ss:$12 sps:$4 sm:$0xff]   ;;  %v2773_v40 = vld [vmem:[#allocation15 + $0x78] ss:$12 sps:$4 sm:$0xff]   ;;  %v2777_v46 = vld [vmem:[#allocation15 + $0x90] ss:$12 sps:$4 sm:$0xff]  }
 0x15d   : > { %v2780_v47 = vld [vmem:[#allocation15 + $0x98] ss:$12 sps:$4 sm:$0xff]   ;;  %v2207_v54 = vld [vmem:[%s3962_s8] ss:$0 sm:$0xff] }
 0x15e   : > { %2364 = vmatpush3.bf16.msra.mxu0 %v2729_v10  ;;  %v2739_v10 = vld [vmem:[#allocation12 + $0x8] sm:$0xff]  }
 0x15f   : > { %2384 = vmatpush3.bf16.msra.mxu1 %v2730_v11  ;;  %2365 = vmatprep.subr.bf16.mxu0 %v3291_v2  ;;  %v2741_v11 = vld [vmem:[#allocation12 + $0x10] sm:$0xff]  }
 0x160   : > { %2385 = vmatprep.subr.bf16.mxu1 %v3291_v2 }
 0x162   : > { %2366 = vmatpush3.bf16.msra.mxu0 %v2731_v12  ;;  %v2743_v12 = vld [vmem:[#allocation12 + $0x18] sm:$0xff]  }
 0x163   : > { %2386 = vmatpush3.bf16.msra.mxu1 %v2732_v13  ;;  %2367 = vmatprep.subr.bf16.mxu0 %v3291_v2  ;;  %v2745_v13 = vld [vmem:[#allocation12 + $0x20] sm:$0xff]  }
 0x164   : > { %2387 = vmatprep.subr.bf16.mxu1 %v3291_v2 }
 0x166   : > { %2368 = vmatpush3.bf16.msra.mxu0 %v2733_v14  ;;  %v2747_v14 = vld [vmem:[#allocation12 + $0x28] sm:$0xff]  }
 0x167   : > { %2388 = vmatpush3.bf16.msra.mxu1 %v2734_v15  ;;  %2369 = vmatprep.subr.bf16.mxu0 %v3291_v2  ;;  %v2749_v15 = vld [vmem:[#allocation12 + $0x30] sm:$0xff]  }
 0x168   : > { %2389 = vmatprep.subr.bf16.mxu1 %v3291_v2 }
 0x16a   : > { %2370 = vmatpush3.bf16.msra.mxu0 %v2735_v16  ;;  %v2751_v16 = vld [vmem:[#allocation12 + $0x38] sm:$0xff]  }
 0x16b   : > { %2390 = vmatpush3.bf16.msra.mxu1 %v2736_v18  ;;  %2530 = vmatprep.subr.bf16.mxu0 %v3293_v36  ;;  %v2752_v18 = vld [vmem:[#allocation14 + $0x38] sm:$0xff]  }
 0x16c   : > { %2430 = vmatprep.subr.bf16.mxu1 %v3291_v2 }
 0x16d   : > { %2372 = vmatmul.mubr.bf16.vlgmr.msra.gmra.mrb[0].mxu0 %v3767_v20 }
 0x16e   : > { %2392 = vmatmul.mubr.bf16.vlgmr.msra.gmra.mrb[0].mxu1 %v3769_v21  ;;  %2427 = vmatprep.mubr.msk.f32.mxu0 %vm3292_vm0, %v3291_v2 }
 0x16f   : > { %2446 = vmatprep.mubr.msk.bf16.mxu1 %vm3292_vm0, %v3291_v2  ;;  %2532 = vmatpush3.bf16.msra.mxu0 %v2531_v37  ;;  %v2771_v37 = vld [vmem:[#allocation15 + $0x64] ss:$12 sps:$4 sm:$0xff]  }
 0x170   : > { %2533 = vmatprep.subr.bf16.mxu0 %v3293_v36  ;;  %2431 = vmatpush3.bf16.msra.mxu1 %v2738_v62  ;;  %v2806_v62 = vld [vmem:[#allocation17 + $0x8] ss:$12 sps:$4 sm:$0xff]  }
 0x171   : > { %2432 = vmatprep.subr.bf16.mxu1 %v3291_v2 }
 0x173   : > { %2535 = vmatpush3.bf16.msra.mxu0 %v2534_v39  ;;  %v2775_v39 = vld [vmem:[#allocation15 + $0x7c] ss:$12 sps:$4 sm:$0xff]  }
 0x174   : > { %2536 = vmatprep.subr.bf16.mxu0 %v3293_v36  ;;  %2433 = vmatpush3.bf16.msra.mxu1 %v2740_v63 }
 0x175   : > { %2434 = vmatprep.subr.bf16.mxu1 %v3291_v2 }
 0x177   : > { %2538 = vmatpush3.bf16.msra.mxu0 %v2537_v42 }
 0x178   : > { %2539 = vmatprep.subr.bf16.mxu0 %v3293_v36  ;;  %2435 = vmatpush3.bf16.msra.mxu1 %v2742_v0  ;;  %v2790_v0 = vld [vmem:[#allocation17 + $0x1c] ss:$12 sps:$4 sm:$0xff]  }
 0x179   : > { %2436 = vmatprep.subr.bf16.mxu1 %v3291_v2 }
 0x17b   : > { %2541 = vmatpush3.bf16.msra.mxu0 %v2540_v45  ;;  %v2779_v45 = vld [vmem:[#allocation15 + $0x94] ss:$12 sps:$4 sm:$0xff]  }
 0x17c   : > { %2542 = vmatprep.subr.bf16.mxu0 %v3293_v36  ;;  %2437 = vmatpush3.bf16.msra.mxu1 %v2744_v1  ;;  %v2788_v1 = vld [vmem:[#allocation17 + $0x18] ss:$12 sps:$4 sm:$0xff]  }
 0x17d   : > { %2438 = vmatprep.subr.bf16.mxu1 %v3291_v2 }
 0x17f   : > { %2544 = vmatpush3.bf16.msra.mxu0 %v2543_v48  ;;  %v2783_v48 = vld [vmem:[#allocation15 + $0xac] ss:$12 sps:$4 sm:$0xff]  }
 0x180   : > { %2545 = vmatprep.subr.bf16.mxu0 %v3293_v36  ;;  %2439 = vmatpush3.bf16.msra.mxu1 %v2746_v3  ;;  %v2810_v3 = vld [vmem:[#allocation17 + $0x20] ss:$12 sps:$4 sm:$0xff]  }
 0x181   : > { %2440 = vmatprep.subr.bf16.mxu1 %v3291_v2 }
 0x183   : > { %2547 = vmatpush3.bf16.msra.mxu0 %v2546_v55 }
 0x184   : > { %2548 = vmatprep.subr.bf16.mxu0 %v3293_v36  ;;  %2441 = vmatpush3.bf16.msra.mxu1 %v2748_v4  ;;  %v2793_v4 = vld [vmem:[#allocation17 + $0x34] ss:$12 sps:$4 sm:$0xff]  }
 0x185   : > { %2442 = vmatprep.subr.bf16.mxu1 %v3291_v2 }
 0x187   : > { %2550 = vmatpush3.bf16.msra.mxu0 %v2549_v58 }
 0x188   : > { %2551 = vmatprep.subr.bf16.mxu0 %v3293_v36  ;;  %2443 = vmatpush3.bf16.msra.mxu1 %v2750_v5  ;;  %v2765_v36 = vld [vmem:[#allocation15 + $0x48] ss:$12 sps:$4 sm:$0xff]   ;;  %v2791_v5 = vld [vmem:[#allocation17 + $0x30] ss:$12 sps:$4 sm:$0xff]  }
 0x189   : > { %2444 = vmatprep.subr.bf16.mxu1 %v3291_v2 }
 0x18b   : > { %2553 = vmatpush3.bf16.msra.mxu0 %v2552_v61  ;;  %v2785_v61 = vld [vmem:[#allocation17] ss:$12 sps:$4 sm:$0xff]  }
 0x18c   : > { %2450 = vmatprep.subr.bf16.mxu0 %v3291_v2  ;;  %2445 = vmatpush3.bf16.msra.mxu1 %v2752_v18  ;;  %v2803_v18 = vld [vmem:[#allocation17 + $0x90] ss:$12 sps:$4 sm:$0xff]  }
 0x18d   : > { %1420 = vmatprep.subr.bf16.mxu1 %v2755_v19  ;;  %v2815_v19 = vld [vmem:[#allocation17 + $0x98] ss:$12 sps:$4 sm:$0xff]  }
 0x240   : > { %v826_v22 = vpop.f32.mrb[0].mxu0 }
 0x241   : > { %v914_v23 = vpop.f32.mrb[0].mxu1  ;;  %v2373_v24 = vpop.f32.mrb[1].mxu0 }
 0x242   : > { %v915_v26 = vadd.f32 %v914_v23, %v826_v22  ;;  %v2393_v27 = vpop.f32.mrb[1].mxu1  ;;  %v829_v28 = vpop.f32.mrb[2].mxu0  ;;  %v2756_v22 = vld [vmem:[#allocation15 + $0x8] ss:$12 sps:$4 sm:$0xff]   ;;  %v2760_v23 = vld [vmem:[#allocation15 + $0x20] ss:$12 sps:$4 sm:$0xff]  }
 0x243   : > { %v917_v29 = vpop.f32.mrb[2].mxu1  ;;  %v2374_v30 = vpop.f32.mrb[3].mxu0  ;;  %v2764_v24 = vld [vmem:[#allocation15 + $0x38] ss:$12 sps:$4 sm:$0xff]   ;;  %v2753_v28 = vld [vmem:[#allocation15] ss:$12 sps:$4 sm:$0xff]  }
 0x244   : > { %v2394_v31 = vpop.f32.mrb[3].mxu1  ;;  %v927_v32 = vadd.f32 %v2190_v25, %v915_v26  ;;  %v2772_v25 = vld [vmem:[#allocation15 + $0x68] ss:$12 sps:$4 sm:$0xff]   ;;  %v2776_v26 = vld [vmem:[#allocation15 + $0x80] ss:$12 sps:$4 sm:$0xff]  }
 0x245   : > { %v2759_v31 = vld [vmem:[#allocation15 + $0x1c] ss:$12 sps:$4 sm:$0xff]  }
 0x246   : > { %928 = vmax.xlane.f32.xlu0 %v927_v32 }
 0x2d3   : > { %v929_v49 = vpop.xlane.xlu0 %928 }
 0x2d4   : > { %v930_v50 = vsub.f32 %v927_v32, %v929_v49  ;;  %v2757_v32 = vld [vmem:[#allocation15 + $0x18] ss:$12 sps:$4 sm:$0xff]   ;;  %v2781_v49 = vld [vmem:[#allocation15 + $0xa8] ss:$12 sps:$4 sm:$0xff]  }
 0x2d6   : > { %v931_v51 = vmul.f32 1.442695, %v930_v50  ;;  %v2784_v50 = vld [vmem:[#allocation15 + $0xb0] ss:$12 sps:$4 sm:$0xff]  }
 0x2d8   : > { %2825 = vpow2.f32 %v931_v51  ;;  %v2787_v51 = vld [vmem:[#allocation17 + $0x4] ss:$12 sps:$4 sm:$0xff]  }
 0x2e2   : > { %v2826_v52 = vpop.eup %2825 }
 0x2e3   : > { %933 = vadd.xlane.f32.xlu0 %v2826_v52 }
 0x370   : > { %v934_v6 = vpop.xlane.xlu0 %933 }
 0x371   : > { %2827 = vrcp.f32 %v934_v6  ;;  %v2811_v6 = vld [vmem:[#allocation17 + $0x38] ss:$12 sps:$4 sm:$0xff]  }
 0x37b   : > { %v2828_v7 = vpop.eup %2827 }
 0x37c   : > { %v936_v9 = vmul.f32 %v2828_v7, %v2826_v52  ;;  %v3294_v52 = vmov 0   ;;  %v2796_v7 = vld [vmem:[#allocation17 + $0x4c] ss:$12 sps:$4 sm:$0xff]  }
 0x37e   : > { %2428 = vmatmul.mubr.f32.vlgmr.msra.gmra.mrb[4].mxu0 %v936_v9  ;;  %937 = vst [vmem:[%s698_s17] sm:$0xff] %v936_v9  ;;  %v2812_v9 = vld [vmem:[#allocation17 + $0x50] ss:$12 sps:$4 sm:$0xff]  }
 0x37f   : > { %2451 = vmatpush3.bf16.msra.mxu0 %v2737_v8  ;;  %2466 = vmatprep.mubr.msk.bf16.mxu0 %vm3292_vm0, %v3291_v2  ;;  %v2794_v8 = vld [vmem:[#allocation17 + $0x48] ss:$12 sps:$4 sm:$0xff]  }
 0x380   : > { %2452 = vmatprep.subr.bf16.mxu0 %v3291_v2 }
 0x383   : > { %2453 = vmatpush3.bf16.msra.mxu0 %v2739_v10  ;;  %v2799_v10 = vld [vmem:[#allocation17 + $0x64] ss:$12 sps:$4 sm:$0xff]  }
 0x384   : > { %2454 = vmatprep.subr.bf16.mxu0 %v3291_v2 }
 0x387   : > { %2455 = vmatpush3.bf16.msra.mxu0 %v2741_v11  ;;  %v2797_v11 = vld [vmem:[#allocation17 + $0x60] ss:$12 sps:$4 sm:$0xff]  }
 0x388   : > { %2456 = vmatprep.subr.bf16.mxu0 %v3291_v2 }
 0x38b   : > { %2457 = vmatpush3.bf16.msra.mxu0 %v2743_v12  ;;  %v2813_v12 = vld [vmem:[#allocation17 + $0x68] ss:$12 sps:$4 sm:$0xff]  }
 0x38c   : > { %2458 = vmatprep.subr.bf16.mxu0 %v3291_v2 }
 0x38f   : > { %2459 = vmatpush3.bf16.msra.mxu0 %v2745_v13  ;;  %v2802_v13 = vld [vmem:[#allocation17 + $0x7c] ss:$12 sps:$4 sm:$0xff]  }
 0x390   : > { %2460 = vmatprep.subr.bf16.mxu0 %v3291_v2 }
 0x393   : > { %2461 = vmatpush3.bf16.msra.mxu0 %v2747_v14  ;;  %v2800_v14 = vld [vmem:[#allocation17 + $0x78] ss:$12 sps:$4 sm:$0xff]  }
 0x394   : > { %2462 = vmatprep.subr.bf16.mxu0 %v3291_v2 }
 0x397   : > { %2463 = vmatpush3.bf16.msra.mxu0 %v2749_v15  ;;  %v2814_v15 = vld [vmem:[#allocation17 + $0x80] ss:$12 sps:$4 sm:$0xff]  }
 0x398   : > { %2464 = vmatprep.subr.bf16.mxu0 %v3291_v2 }
 0x39b   : > { %2465 = vmatpush3.bf16.msra.mxu0 %v2751_v16  ;;  %v2805_v16 = vld [vmem:[#allocation17 + $0x94] ss:$12 sps:$4 sm:$0xff]  }
 0x39c   : > { %2470 = vmatprep.subr.bf16.mxu0 %v3291_v2 }
 0x39e   : > { %2467 = vmatmul.mubr.bf16.vlgmr.msra.gmra.mrb[8].mxu0 %v3769_v21  ;;  %v2768_v21 = vld [vmem:[#allocation15 + $0x50] ss:$12 sps:$4 sm:$0xff]  }
 0x39f   : > { %2486 = vmatprep.mubr.msk.bf16.mxu0 %vm3292_vm0, %v3291_v2  ;;  %2471 = vmatpush3.bf16.msra.mxu0 %v2756_v22  ;;  %v2809_v22 = vld [vmem:[#allocation17 + $0xac] ss:$12 sps:$4 sm:$0xff]  }
 0x3a0   : > { %2472 = vmatprep.subr.bf16.mxu0 %v3291_v2 }
 0x3a3   : > { %2473 = vmatpush3.bf16.msra.mxu0 %v2760_v23  ;;  %v2807_v23 = vld [vmem:[#allocation17 + $0xa8] ss:$12 sps:$4 sm:$0xff]  }
 0x3a4   : > { %2474 = vmatprep.subr.bf16.mxu0 %v3291_v2 }
 0x3a7   : > { %2475 = vmatpush3.bf16.msra.mxu0 %v2764_v24  ;;  %v2816_v24 = vld [vmem:[#allocation17 + $0xb0] ss:$12 sps:$4 sm:$0xff]  }
 0x3a8   : > { %2476 = vmatprep.subr.bf16.mxu0 %v3291_v2 }
 0x3ab   : > { %2477 = vmatpush3.bf16.msra.mxu0 %v2768_v21  ;;  %v2817_v21 = vld [vmem:[#allocation18] sm:$0xff]  }
 0x3ac   : > { %2478 = vmatprep.subr.bf16.mxu0 %v3291_v2 }
 0x3af   : > { %2479 = vmatpush3.bf16.msra.mxu0 %v2772_v25  ;;  %v2818_v25 = vld [vmem:[#allocation18 + $0x8] sm:$0xff]  }
 0x3b0   : > { %2480 = vmatprep.subr.bf16.mxu0 %v3291_v2 }
 0x3b3   : > { %2481 = vmatpush3.bf16.msra.mxu0 %v2776_v26  ;;  %v2819_v26 = vld [vmem:[#allocation18 + $0x10] sm:$0xff]  }
 0x3b4   : > { %2482 = vmatprep.subr.bf16.mxu0 %v3291_v2 }
 0x3b7   : > { %2483 = vmatpush3.bf16.msra.mxu0 %v2780_v47 }
 0x3b8   : > { %2484 = vmatprep.subr.bf16.mxu0 %v3291_v2 }
 0x3bb   : > { %2485 = vmatpush3.bf16.msra.mxu0 %v2784_v50 }
 0x3bc   : > { %2490 = vmatprep.subr.bf16.mxu0 %v3291_v2 }
 0x451   : > { %v1020_v27 = vpop.f32.mrb[4].mxu0 }
 0x452   : > { %v1040_v29 = vpack.c.bf16 %v1020_v27, %v1020_v27  ;;  %v2429_v30 = vpop.f32.mrb[5].mxu0  ;;  %v2820_v27 = vld [vmem:[#allocation18 + $0x18] sm:$0xff]  }
 0x453   : > { %v2824_v30 = vld [vmem:[#allocation18 + $0x38] sm:$0xff]  }
 0x454   : > { %2447 = vmatmul.mubr.bf16.vlgmr.msra.gmra.mrb[4].mxu1 %v1040_v29  ;;  %v2823_v29 = vld [vmem:[#allocation18 + $0x30] sm:$0xff]  }
 0x455   : > { %1421 = vmatpush1.bf16.msra.mxu1 %v2753_v28  ;;  %1452 = vmatprep.mubr.bf16.mxu1 %v3294_v52  ;;  %v2822_v28 = vld [vmem:[#allocation18 + $0x28] sm:$0xff]  }
 0x456   : > { %1422 = vmatprep.subr.bf16.mxu1 %v2759_v31 }
 0x459   : > { %1423 = vmatpush1.bf16.msra.mxu1 %v2757_v32 }
 0x45a   : > { %1424 = vmatprep.subr.bf16.mxu1 %v2763_v33 }
 0x45d   : > { %1425 = vmatpush1.bf16.msra.mxu1 %v2761_v34 }
 0x45e   : > { %1426 = vmatprep.subr.bf16.mxu1 %v2767_v35  ;;  %v1277_v35 = vlaneseq }
 0x461   : > { %1427 = vmatpush1.bf16.msra.mxu1 %v2765_v36  ;;  %v1278_v36 = vshrl.u32 %v1277_v35, 7 }
 0x462   : > { %1428 = vmatprep.subr.bf16.mxu1 %v2771_v37 }
 0x463   : > { %v1279_v37 = vsub.s32 0, %v1278_v36 }
 0x465   : > { %1429 = vmatpush1.bf16.msra.mxu1 %v2769_v38  ;;  %v1533_v38 = vld [vmem:[%s4032_s22] sm:$0x7] }
 0x466   : > { %1430 = vmatprep.subr.bf16.mxu1 %v2775_v39  ;;  %v1275_v39 = vld [vmem:[%s4033_s21] sm:$0x7]  ;;  %s3856_s21 = scalar_lea.hbm %s4035_s16, %s2269_s11 }
 0x469   : > { %1431 = vmatpush1.bf16.msra.mxu1 %v2773_v40  ;;  %v1283_v40 = vsub.s32 1, %v1278_v36 }
 0x46a   : > { %1432 = vmatprep.subr.bf16.mxu1 %v2779_v45 }
 0x46d   : > { %1433 = vmatpush1.bf16.msra.mxu1 %v2777_v46 }
 0x46e   : > { %1434 = vmatprep.subr.bf16.mxu1 %v2783_v48 }
 0x471   : > { %v1227_v41 = vpop.f32.mrb[8].mxu0  ;;  %1435 = vmatpush1.bf16.msra.mxu1 %v2781_v49 }
 0x472   : > { %v2468_v42 = vpop.f32.mrb[9].mxu0  ;;  %1678 = vmatprep.subr.bf16.mxu1 %v2787_v51 }
 0x473   : > { %v1230_v43 = vpop.f32.mrb[10].mxu0  ;;  %v1538_v42 = vrot.slane %v1533_v38, %v1279_v37 }
 0x474   : > { %v2469_v44 = vpop.f32.mrb[11].mxu0  ;;  %v1542_v43 = vrot.slane %v1533_v38, %v1283_v40 }
 0x527   : > { %v1139_v53 = vpop.f32.mrb[4].mxu1 }
 0x528   : > { %v1228_v55 = vadd.f32 %v1227_v41, %v1139_v53  ;;  %v2448_v56 = vpop.f32.mrb[5].mxu1  ;;  %v1280_v41 = vrot.slane %v1275_v39, %v1279_v37 }
 0x529   : > { %v1142_v57 = vpop.f32.mrb[6].mxu1 }
 0x52a   : > { %v1240_v58 = vadd.f32 %v2207_v54, %v1228_v55  ;;  %v2449_v59 = vpop.f32.mrb[7].mxu1  ;;  %v2554_v44 = vadd.f32 %v1538_v42, %v1280_v41 }
 0x52c   : > { %v1241_v60 = vmax.f32 %v1240_v58, 0.0 }
 0x52e   : > { %v1242_v63 = vpack.c.bf16 %v1241_v60, %v1241_v60  ;;  %v1287_v60 = vsub.s32 2, %v1278_v36 }
 0x530   : > { %1453 = vmatmul.mubr.bf16.vlgmr.msra.gmra.mrb[8].mxu1 %v1242_v63  ;;  %2487 = vmatmul.mubr.bf16.vlgmr.msra.gmra.mrb[12].mxu0 %v1242_v63  ;;  %v1288_v63 = vrot.slane %v1275_v39, %v1287_v60 }
 0x531   : > { %1679 = vmatpush1.bf16.msra.mxu1 %v2785_v61  ;;  %2491 = vmatpush3.bf16.msra.mxu0 %v2806_v62  ;;  %v1546_v61 = vrot.slane %v1533_v38, %v1287_v60 }
 0x532   : > { %1680 = vmatprep.subr.bf16.mxu1 %v2790_v0  ;;  %2492 = vmatprep.subr.bf16.mxu0 %v3291_v2 }
 0x533   : > { %1710 = vmatprep.mubr.bf16.mxu1 %v3294_v52  ;;  %2506 = vmatprep.mubr.msk.bf16.mxu0 %vm3292_vm0, %v3291_v2 }
 0x535   : > { %1681 = vmatpush1.bf16.msra.mxu1 %v2788_v1  ;;  %2493 = vmatpush3.bf16.msra.mxu0 %v2810_v3 }
 0x536   : > { %1682 = vmatprep.subr.bf16.mxu1 %v2793_v4  ;;  %2494 = vmatprep.subr.bf16.mxu0 %v3291_v2 }
 0x539   : > { %1683 = vmatpush1.bf16.msra.mxu1 %v2791_v5  ;;  %2495 = vmatpush3.bf16.msra.mxu0 %v2811_v6 }
 0x53a   : > { %1684 = vmatprep.subr.bf16.mxu1 %v2796_v7  ;;  %2496 = vmatprep.subr.bf16.mxu0 %v3291_v2 }
 0x53d   : > { %1685 = vmatpush1.bf16.msra.mxu1 %v2794_v8  ;;  %2497 = vmatpush3.bf16.msra.mxu0 %v2812_v9 }
 0x53e   : > { %1686 = vmatprep.subr.bf16.mxu1 %v2799_v10  ;;  %2498 = vmatprep.subr.bf16.mxu0 %v3291_v2 }
 0x541   : > { %1687 = vmatpush1.bf16.msra.mxu1 %v2797_v11  ;;  %2499 = vmatpush3.bf16.msra.mxu0 %v2813_v12 }
 0x542   : > { %1688 = vmatprep.subr.bf16.mxu1 %v2802_v13  ;;  %2500 = vmatprep.subr.bf16.mxu0 %v3291_v2 }
 0x545   : > { %1689 = vmatpush1.bf16.msra.mxu1 %v2800_v14  ;;  %2501 = vmatpush3.bf16.msra.mxu0 %v2814_v15  ;;  %v2258_v14 = vld [vmem:[%s4034_s14] ss:$0 sm:$0xff]  ;;  %s3125_s14 = scalar_lea.vmem %s1938_s6, 128 }
 0x546   : > { %1690 = vmatprep.subr.bf16.mxu1 %v2805_v16  ;;  %2502 = vmatprep.subr.bf16.mxu0 %v3291_v2  ;;  %p3126_p4 = scmp.ne.s32.totalorder %s1938_s6, %s3125_s14  ;;  %p3133_p2 = scmp.lt.s32.totalorder %s3131_s2, %s3125_s14 }
 0x548   : > { %p3127_p1 = pnand %p3126_p4, %p4036_p10  ;;  %p3134_p8 = por %p3133_p2, %p3132_p0 }
 0x549   : > { %1691 = vmatpush1.bf16.msra.mxu1 %v2803_v18  ;;  %2503 = vmatpush3.bf16.msra.mxu0 %v2815_v19 }
 0x54a   : > { %1692 = vmatprep.subr.bf16.mxu1 %v2809_v22  ;;  %2504 = vmatprep.subr.bf16.mxu0 %v3291_v2  ;;  %p3128_p6 = pneg %p3127_p1 }
 0x54c   : > { %p3135_p9 = pnand %p3134_p8, %p3128_p6 }
 0x54d   : > { %1693 = vmatpush1.bf16.msra.mxu1 %v2807_v23  ;;  %2505 = vmatpush3.bf16.msra.mxu0 %v2816_v24 }
 0x54e   : > { %2510 = vmatprep.subr.bf16.mxu1 %v3291_v2 }
 0x550   : > { %1711 = vmatmul.mubr.bf16.vlgmr.msra.gmra.mrb[8].mxu1 %v3767_v20  ;;  %2507 = vmatmul.mubr.bf16.vlgmr.msra.gmra.mrb[16].mxu0 %v3767_v20  ;;  %v2821_v20 = vld [vmem:[#allocation18 + $0x20] sm:$0xff]  }
 0x551   : > { %2526 = vmatprep.mubr.msk.bf16.mxu1 %vm3292_vm0, %v3291_v2  ;;  %2511 = vmatpush3.bf16.msra.mxu1 %v2817_v21 }
 0x552   : > { %2512 = vmatprep.subr.bf16.mxu1 %v3291_v2 }
 0x555   : > { %2513 = vmatpush3.bf16.msra.mxu1 %v2818_v25 }
 0x556   : > { %2514 = vmatprep.subr.bf16.mxu1 %v3291_v2 }
 0x559   : > { %2515 = vmatpush3.bf16.msra.mxu1 %v2819_v26 }
 0x55a   : > { %2516 = vmatprep.subr.bf16.mxu1 %v3291_v2 }
 0x55d   : > { %2517 = vmatpush3.bf16.msra.mxu1 %v2820_v27 }
 0x55e   : > { %2518 = vmatprep.subr.bf16.mxu1 %v3291_v2 }
 0x561   : > { %2519 = vmatpush3.bf16.msra.mxu1 %v2821_v20 }
 0x562   : > { %2520 = vmatprep.subr.bf16.mxu1 %v3291_v2 }
 0x565   : > { %2521 = vmatpush3.bf16.msra.mxu1 %v2822_v28 }
 0x566   : > { %2522 = vmatprep.subr.bf16.mxu1 %v3291_v2 }
 0x569   : > { %2523 = vmatpush3.bf16.msra.mxu1 %v2823_v29 }
 0x56a   : > { %2524 = vmatprep.subr.bf16.mxu1 %v3291_v2  ;;  %v1284_v2 = vrot.slane %v1275_v39, %v1283_v40 }
 0x56c   : > { %v2556_v46 = vadd.f32 %v1542_v43, %v1284_v2 }
 0x56d   : > { %2525 = vmatpush3.bf16.msra.mxu1 %v2824_v30 }
 0x603   : > { %v1495_v31 = vpop.f32.mrb[12].mxu0 }
 0x604   : > { %v2488_v32 = vpop.f32.mrb[13].mxu0  ;;  %v1496_v4 = vadd.f32 %v1495_v31, %v1288_v63 }
 0x605   : > { %v1498_v33 = vpop.f32.mrb[14].mxu0 }
 0x606   : > { %v2489_v34 = vpop.f32.mrb[15].mxu0 }
 0x623   : > { %v1712_v45 = vpop.f32.mrb[8].mxu1  ;;  %v1753_v47 = vpop.f32.mrb[16].mxu0 }
 0x624   : > { %v2555_v48 = vadd.f32 %v2554_v44, %v1712_v45  ;;  %v1714_v49 = vpop.f32.mrb[9].mxu1  ;;  %v2508_v50 = vpop.f32.mrb[17].mxu0  ;;  %v1754_v1 = vadd.f32 %v1753_v47, %v1546_v61 }
 0x625   : > { %v1716_v51 = vpop.f32.mrb[10].mxu1  ;;  %v1756_v52 = vpop.f32.mrb[18].mxu0  ;;  %v2557_v56 = vadd.f32 %v2556_v46, %v1714_v49 }
 0x626   : > { %v2256_v53 = vmul.f32 -1.442695, %v2555_v48  ;;  %v1717_v54 = vpop.f32.mrb[11].mxu1  ;;  %v2509_v55 = vpop.f32.mrb[19].mxu0 }
 0x627   : > { %v2257_v57 = vmul.f32 -1.442695, %v2557_v56 }
 0x628   : > { %2829 = vpow2.f32 %v2256_v53 }
 0x629   : > { %2831 = vpow2.f32 %v2257_v57 }
 0x632   : > { %v2830_v58 = vpop.eup %2829 }
 0x633   : > { %v1763_v59 = vadd.f32 1.0, %v2830_v58  ;;  %v2832_v62 = vpop.eup %2831 }
 0x634   : > { %v1770_v0 = vadd.f32 1.0, %v2832_v62 }
 0x635   : > { %2833 = vrcp.f32 %v1763_v59 }
 0x636   : > { %2835 = vrcp.f32 %v1770_v0 }
 0x63f   : > { %v2834_v3 = vpop.eup %2833 }
 0x640   : > { %v1773_v5 = vmul.f32 %v2834_v3, %v1754_v1  ;;  %v2836_v7 = vpop.eup %2835 }
 0x641   : > { %v1776_v8 = vsub.f32 1.0, %v2836_v7  ;;  %v1778_v11 = vmul.f32 %v2836_v7, %v3759_v17 }
 0x642   : > { %v1774_v6 = vadd.f32 %v1773_v5, %v1496_v4 }
 0x644   : > { %2837 = vtanh.f32 %v1774_v6 }
 0x64e   : > { %v2838_v9 = vpop.eup %2837 }
 0x64f   : > { %v1777_v10 = vmul.f32 %v2838_v9, %v1776_v8 }
 0x651   : > { %v1779_v12 = vadd.f32 %v1778_v11, %v1777_v10 }
 0x653   : > { %1780 = vst [vmem:[#allocation2] sm:$0xff] %v1779_v12  ;;  %v1782_v13 = vpack.c.bf16 %v1779_v12, %v1779_v12  ;;  %1781 = vst [vmem:[#allocation23] sm:$0xff] %v1779_v12 }
 0x655   : > { %2527 = vmatmul.mubr.bf16.vlgmr.msra.gmra.mrb[12].mxu1 %v1782_v13 }
 0x728   : > { %v1888_v15 = vpop.f32.mrb[12].mxu1 }
 0x729   : > { %v1889_v16 = vadd.f32 %v2258_v14, %v1888_v15  ;;  %v2528_v18 = vpop.f32.mrb[13].mxu1 }
 0x72a   : > { %v1891_v19 = vpop.f32.mrb[14].mxu1 }
 0x72b   : > { %1894 = vmax.xlane.f32.xlu1 %v1889_v16  ;;  %v2529_v17 = vpop.f32.mrb[15].mxu1 }
 0x7b8   : > { %v1895_v22 = vpop.xlane.xlu1 %1894 }
 0x7b9   : > { %v3846_v23 = vsub.f32 %v1889_v16, %v1895_v22 }
 0x7bb   : > { %v1897_v24 = vmul.f32 1.442695, %v3846_v23 }
 0x7bd   : > { %2839 = vpow2.f32 %v1897_v24 }
 0x7c7   : > { %v2840_v21 = vpop.eup %2839 }
 0x7c8   : > { %1899 = vadd.xlane.f32.xlu1 %v2840_v21 }
 0x7c9   : > { %3138 = shalt.err (!%p3135_p9)
}
 0x7ca   : > { %s3139_s17 = scalar_lea.hbm %s3856_s21, 128  ;;  %s3143_s1 = scalar_lea.hbm %s4035_s16, 896 }
 0x7cb   : > { %p3140_p12 = scmp.ne.s32.totalorder %s3856_s21, %s3139_s17  ;;  %p3144_p5 = scmp.lt.u32.totalorder %s3856_s21, %s4035_s16 }
 0x7cc   : > { %p3145_p7 = scmp.lt.u32.totalorder %s3143_s1, %s3139_s17  ;;  %p3147_p4 = scmp.lt.u32.totalorder %s3139_s17, %s3856_s21 }
 0x7cd   : > { %p3141_p11 = pnand %p3140_p12, %p4036_p10 }
 0x7ce   : > { %p3146_p3 = por %p3145_p7, %p3144_p5 }
 0x7cf   : > { %p3142_p13 = pneg %p3141_p11 }
 0x7d0   : > { %p3148_p1 = por %p3147_p4, %p3146_p3 }
 0x7d2   : > { %p3149_p6 = pnand %p3148_p1, %p3142_p13 }
 0x7d4   : > { %3152 = shalt.err (!%p3149_p6)
}
 0x7d5   : > { %2601 = dma.vmem_to_hbm [thread:$0]  (%p4036_p10), %s1938_s6, 128, %s3856_s21, %s1911_s20  }
 0x7d6   : > { %s3296_s2 = smov [#allocation23]   ;;  %p4037_p2 = scmp.eq.s32.totalorder %s3409_s0, 6 }
 0x7d7   : > { %s1948_s14 = sshll.u32 %s3296_s2, 4  ;;  %s1949_s14 = int_to_ptr.vmem [resolvable:$true] %s1948_s14 }
 0x7d8   : > { %s3153_s12 = scalar_lea.vmem %s1949_s14, 128  ;;  %p3160_p12 = scmp.lt.s32.totalorder %s1949_s14, %s1949_s14 }
 0x7d9   : > { %p3154_p0 = scmp.ne.s32.totalorder %s1949_s14, %s3153_s12  ;;  %p3161_p11 = scmp.lt.s32.totalorder %s3153_s12, %s3153_s12 }
 0x7db   : > { %p3155_p8 = pnand %p3154_p0, %p4037_p2  ;;  %p3162_p5 = por %p3161_p11, %p3160_p12 }
 0x7dd   : > { %p3156_p9 = pneg %p3155_p8 }
 0x7df   : > { %p3163_p7 = pnand %p3162_p5, %p3156_p9 }
 0x7e1   : > { %3166 = shalt.err (!%p3163_p7)
}
 0x7e2   : > { %s4038_s1 = sld [smem:[#allocation44_spill]]  ;;  %p4039_p3 = pmov %p4037_p2 }
 0x7e8   : > { %s3167_s29 = scalar_lea.hbm %s4038_s1, 128 }
 0x7e9   : > { %p3168_p13 = scmp.ne.s32.totalorder %s4038_s1, %s3167_s29  ;;  %p3173_p6 = scmp.lt.u32.totalorder %s3167_s29, %s4038_s1 }
 0x7eb   : > { %p3169_p4 = pnand %p3168_p13, %p4039_p3 }
 0x7ed   : > { %p3170_p1 = pneg %p3169_p4 }
 0x7ef   : > { %p3175_p0 = pnand %p3173_p6, %p3170_p1 }
 0x7f1   : > { %3178 = shalt.err (!%p3175_p0)
}
 0x7f2   : > { %2603 = dma.vmem_to_hbm [thread:$0]  (%p4037_p2), %s1949_s14, 128, %s4038_s1, [#allocation22]  }
 0x7f3   : > { %s4040_s17 = scalar_lea.vmem [#allocation20], %s3709_s15  ;;  %s4041_s21 = sld [smem:[#allocation42_spill]] }
 0x7f4   : > { %s1924_s22 = sshll.u32 %s4040_s17, 4  ;;  %s4042_s20 = smov %s4040_s17  ;;  %s3905_s22 = int_to_ptr.vmem [resolvable:$true] %s1924_s22 }
 0x7f5   : > { %s1906_s14 = scalar_lea.sflag [#allocation5], %s3706_s23  ;;  %s3179_s2 = scalar_lea.vmem %s3905_s22, 128 }
 0x7f6   : > { %p3180_p8 = scmp.ne.s32.totalorder %s3905_s22, %s3179_s2  ;;  %s3297_s12 = smov [#allocation20]  }
 0x7f7   : > { %s3183_s17 = sshll.u32 %s3297_s12, 4  ;;  %s3184_s17 = int_to_ptr.vmem [resolvable:$false] %s3183_s17 }
 0x7f8   : > { %p3181_p9 = pnand %p3180_p8, %p4036_p10  ;;  %s3185_s1 = scalar_lea.vmem %s3184_s17, 256 }
 0x7f9   : > { %s3903_s6 = scalar_lea.hbm %s4041_s21, %s2269_s11  ;;  %p3186_p11 = scmp.lt.s32.totalorder %s3905_s22, %s3184_s17 }
 0x7fa   : > { %p3182_p12 = pneg %p3181_p9  ;;  %p3187_p5 = scmp.lt.s32.totalorder %s3185_s1, %s3179_s2 }
 0x7fc   : > { %p3188_p7 = por %p3187_p5, %p3186_p11 }
 0x7fe   : > { %p3189_p13 = pnand %p3188_p7, %p3182_p12 }
 0x855   : > { %v1900_v25 = vpop.xlane.xlu1 %1899 }
 0x856   : > { %2841 = vlog2.f32 %v1900_v25 }
 0x860   : > { %v2842_v26 = vpop.eup %2841 }
 0x861   : > { %v1902_v27 = vmul.f32 0.6931472, %v2842_v26 }
 0x863   : > { %v1903_v20 = vsub.f32 %v3846_v23, %v1902_v27 }
 0x865   : > { %1904 = vst [vmem:[%s4042_s20] sm:$0xff] %v1903_v20 }
 0x866   : > { %3192 = shalt.err (!%p3189_p13)
}
 0x867   : > { %s3193_s23 = scalar_lea.hbm %s3903_s6, 128  ;;  %s3197_s29 = scalar_lea.hbm %s4041_s21, 896 }
 0x868   : > { %p3194_p3 = scmp.ne.s32.totalorder %s3903_s6, %s3193_s23  ;;  %p3198_p6 = scmp.lt.u32.totalorder %s3903_s6, %s4041_s21 }
 0x869   : > { %p3199_p0 = scmp.lt.u32.totalorder %s3197_s29, %s3193_s23  ;;  %p3201_p8 = scmp.lt.u32.totalorder %s3193_s23, %s3903_s6 }
 0x86a   : > { %p3195_p4 = pnand %p3194_p3, %p4036_p10 }
 0x86b   : > { %p3200_p2 = por %p3199_p0, %p3198_p6 }
 0x86c   : > { %p3196_p1 = pneg %p3195_p4 }
 0x86d   : > { %p3202_p9 = por %p3201_p8, %p3200_p2 }
 0x86f   : > { %p3203_p12 = pnand %p3202_p9, %p3196_p1 }
 0x871   : > { %3206 = shalt.err (!%p3203_p12)
}
 0x872   : > { %2600 = dma.vmem_to_hbm [thread:$0]  (%p4036_p10), %s3905_s22, 128, %s3903_s6, %s1906_s14  }
 0x873   : > { %p4043_p11 = scmp.eq.s32.totalorder %s3409_s0, 6 }
 0x875   : > { %3248 = dma.done.wait (%p4043_p11), [#allocation22], 128   ;;  %p4044_p5 = pmov %p4043_p11 }
 0x877   : > { %3250 = vsyncadd (%p4044_p5), [#allocation22], 4294967168 }
 0x878 PF: > { %p2668_p7 = scmp.ge.s32.totalorder %s3273_s27, 2  ;;  %s1964_s1 = sand.u32 1, %s3261_s24  }
 0x879   : > { %p4045_p13 = scmp.ne.s32.totalorder %s4017_s3, 0  ;;  %s1965_s2 = scalar_lea.sflag [#allocation5], %s1964_s1 }
 0x87b   : > { %p2641_p3 = pnand %p2668_p7, %p4045_p13 }
 0x87d   : > { %3252 = dma.done.wait (!%p2641_p3), %s1965_s2, 128  }
 0x87e   : > { %3254 = vsyncadd (!%p2641_p3), %s1965_s2, 4294967168  ;;  %s4046_s28 = sadd.s32 4294967294, %s3273_s27  }
 0x87f   : > { %s1973_s12 = sand.u32 1, %s4046_s28  }
 0x880   : > { %s1974_s22 = scalar_lea.sflag [#allocation22], %s1973_s12 }
 0x881   : > { %3256 = dma.done.wait (!%p2641_p3), %s1974_s22, 128  }
 0x882   : > { %3258 = vsyncadd (!%p2641_p3), %s1974_s22, 4294967168  ;;  %p39_p10 = scmp.ge.s32.totalorder %s3632_s18, 9   ;;  %s4047_s24 = smov %s3265_s25 }
 0x883   : > { %s4048_s25 = smov %s3269_s26  ;;  %s4049_s26 = smov %s3644_s9 }
 0x884   : > { %s4050_s27 = smov %s3632_s18  ;;  %41 = sbr.rel (!%p39_p10) target bundleno = 25 (0x19), region = 190 }
 0x88b   :  { %1979 = vsyncpa [#allocation4], 1 }
 0x88c   :  { %1981 = vsyncpa [#allocation4 + $0x1], 1 }
 0x88d   :  { %1982 = vsyncpa [#allocation7], 1 }
 0x88e   :  { %1983 = vsyncpa [#allocation10], 1 }
 0x88f   :  { %1984 = vsyncpa [#allocation13], 1 }
 0x890   :  { %1985 = vsyncpa [#allocation16], 1 }
 0x891   :  { %1986 = vsyncpa [#allocation19], 1 }
 0x892   :  { %1987 = vsyncpa [#allocation5], 1 }
 0x893   :  { %1989 = vsyncpa [#allocation5 + $0x1], 1 }
 0x894   :  { %1990 = vsyncpa [#allocation22], 1 }
 0x895   :  { %1992 = vsyncpa [#allocation22 + $0x1], 1 }

</bundles_post_ra>
